<compile_context>
chip_gen: v6e
topology: v6e:2x2x1
jax: 0.10.0
libtpu: 0.0.40
codegen_flags: <defaults>
</compile_context>

<pallas_src>
import functools

import jax
import jax.numpy as jnp
from jax.experimental import pallas as pl
from jax.experimental.pallas import tpu as pltpu


# ----------------------------- fused kernel ---------------------------------
def _fused_block_kernel(x_ref, t1_ref, t2_ref, g1_ref, b1_ref, g2_ref, b2_ref,
                        o_ref, *, n, h, w, c_out, k, eps=1e-5):
    """Fused Conv->BN->ReLU->Conv->BN->ReLU on a lane-dense (N*H, W*C) layout.

    x_ref : (N*H, W*Cin)       input, rows = (n, h), lanes = (w, c)
    t*_ref: (k, W*Cin_s, W*Cout) banded conv weights (horizontal padding baked in)
    g*/b* : (1, Cout)          BatchNorm gamma / beta
    o_ref : (N*H, W*Cout)      output (lane-dense store, no masked vst)
    """
    nh = n * h
    wcout = w * c_out
    f32 = jnp.float32

    # ---- row-shift matrices: vertical 'same' padding, batch-boundary aware ----
    ri = jax.lax.broadcasted_iota(jnp.int32, (nh, nh), 0)
    ci = jax.lax.broadcasted_iota(jnp.int32, (nh, nh), 1)
    # (s_dn @ X)[r] = X[r-1]   (zero on the first row of each image)
    s_dn = ((ci == ri - 1) & (ri % h != 0)).astype(f32)
    # (s_up @ X)[r] = X[r+1]   (zero on the last row of each image)
    s_up = ((ci == ri + 1) & (ri % h != h - 1)).astype(f32)

    # ---- channel grouping / broadcasting matrices for the (.., W*Cout) layout ----
    li = jax.lax.broadcasted_iota(jnp.int32, (wcout, c_out), 0)
    oi = jax.lax.broadcasted_iota(jnp.int32, (wcout, c_out), 1)
    grp = (li % c_out == oi).astype(f32)          # (W*Cout, Cout): lane -> channel
    li2 = jax.lax.broadcasted_iota(jnp.int32, (c_out, wcout), 1)
    oi2 = jax.lax.broadcasted_iota(jnp.int32, (c_out, wcout), 0)
    exp_ = (li2 % c_out == oi2).astype(f32)       # (Cout, W*Cout): channel -> lane

    def shift_rows(x2, dh):
        if dh == 0:
            return x2
        s = s_dn if dh < 0 else s_up
        for _ in range(abs(dh)):                  # |dh| > 1 only if kernel_size > 3
            x2 = jnp.dot(s, x2, preferred_element_type=f32)
        return x2

    def conv_bn_relu(x2, t_ref, g_ref, b_ref):
        # ---- convolution: k banded matmuls, all lane-dense, f32 accumulation ----
        acc = jnp.zeros((nh, wcout), f32)
        for kh in range(k):                       # static -> unrolled
            acc += jnp.dot(shift_rows(x2, kh - k // 2), t_ref[kh],
                           preferred_element_type=f32)
        # Conv2d bias intentionally dropped: training-mode BN subtracts the batch
        # mean immediately after, which cancels a per-channel constant exactly.

        # ---- BatchNorm2d, training-mode batch stats, single pass (sum, sumsq) ----
        cnt = float(nh * w)
        row_sum = jnp.sum(acc, axis=0, keepdims=True)          # (1, W*Cout)
        row_ssq = jnp.sum(acc * acc, axis=0, keepdims=True)    # (1, W*Cout)
        mean = jnp.dot(row_sum, grp, preferred_element_type=f32) / cnt   # (1, Cout)
        msq = jnp.dot(row_ssq, grp, preferred_element_type=f32) / cnt    # (1, Cout)
        var = msq - mean * mean                                 # biased variance
        scale_ch = g_ref[...].astype(f32) * jax.lax.rsqrt(var + eps)
        shift_ch = b_ref[...].astype(f32) - mean * scale_ch
        scale_l = jnp.dot(scale_ch, exp_, preferred_element_type=f32)    # (1, W*Cout)
        shift_l = jnp.dot(shift_ch, exp_, preferred_element_type=f32)

        # ---- activation = nn.ReLU() ----
        return jnp.maximum(acc * scale_l + shift_l, 0.0)

    y1 = conv_bn_relu(x_ref[...], t1_ref, g1_ref, b1_ref)       # stays in VMEM/vregs
    y2 = conv_bn_relu(y1, t2_ref, g2_ref, b2_ref)

    # Dropout2d with p = 0.0 (or eval mode) is the identity.
    # TODO(synk): training-mode Dropout2d with p > 0 would need a per-channel
    # Bernoulli mask via pltpu.prng_seed / pltpu.prng_random_bits.
    o_ref[...] = y2.astype(o_ref.dtype)


# ------------------------------- wrapper -------------------------------------
def _build_banded_weight(w_hwio, width):
    """(k, k, Cin, Cout) HWIO -> (k, width*Cin, width*Cout) banded matrices.

    T[kh][(x+dw)*Cin + c, x*Cout + o] = w_hwio[kh, dw + k//2, c, o]; out-of-range
    bands are left at zero, which implements the horizontal 'same' padding.
    """
    k, _, c_in, c_out = w_hwio.shape
    p = k // 2
    t = jnp.zeros((k, width * c_in, width * c_out), w_hwio.dtype)
    for kw in range(k):
        dw = kw - p
        for x in range(width):
            xs = x + dw
            if 0 <= xs < width:
                t = t.at[:, xs * c_in:(xs + 1) * c_in,
                         x * c_out:(x + 1) * c_out].set(w_hwio[:, kw])
    return t


def convolution_block(x_nchw, params, kernel_size, dropout_rate=0.0):
    """Forward pass of ConvolutionBlock (training mode). Input/output: NCHW."""
    assert kernel_size % 2 == 1, "'same' padding block expects odd kernel_size"
    del dropout_rate  # Dropout2d(p=0.0) == identity; see TODO in the kernel.

    (w1, _b1, g1, be1), (w2, _b2, g2, be2) = params  # conv biases cancelled by BN
    n, c_in, h, w = x_nchw.shape
    c_out = w1.shape[-1]

    # NCHW -> lane-dense (N*H, W*Cin): channels ride the fast (lane) axis.
    x2 = jnp.transpose(x_nchw, (0, 2, 3, 1)).reshape(n * h, w * c_in)
    t1 = _build_banded_weight(w1, w)   # (k, W*Cin,  W*Cout)
    t2 = _build_banded_weight(w2, w)   # (k, W*Cout, W*Cout)

    kernel = functools.partial(_fused_block_kernel,
                               n=n, h=h, w=w, c_out=c_out, k=kernel_size)

    # Everything fits in VMEM: no grid, no pipelining/double-buffering.
    vmem = pl.BlockSpec(memory_space=pltpu.MemorySpace.VMEM)
    out = pl.pallas_call(
        kernel,
        out_shape=jax.ShapeDtypeStruct((n * h, w * c_out), x_nchw.dtype),
        in_specs=[vmem] * 7,
        out_specs=vmem,
    )(x2, t1, t2, g1, be1, g2, be2)

    return jnp.transpose(out.reshape(n, h, w, c_out), (0, 3, 1, 2))  # -> NCHW


# ----------------------- pure-JAX reference (sanity check) -------------------
def _ref_stage(x_nhwc, w, b, gamma, beta):
    y = jax.lax.conv_general_dilated(
        x_nhwc, w, window_strides=(1, 1), padding="SAME",
        dimension_numbers=("NHWC", "HWIO", "NHWC"))
    y = y + b[0]
    mean = jnp.mean(y, axis=(0, 1, 2), keepdims=True)
    var = jnp.mean((y - mean) ** 2, axis=(0, 1, 2), keepdims=True)
    y = (y - mean) * jax.lax.rsqrt(var + 1e-5) * gamma[0] + beta[0]
    return jnp.maximum(y, 0.0)


def _ref_block(x_nchw, params):
    x = jnp.transpose(x_nchw, (0, 2, 3, 1))
    for (w, b, gamma, beta) in params:
        x = _ref_stage(x, w, b, gamma, beta)
    return jnp.transpose(x, (0, 3, 1, 2))


if __name__ == "__main__":
    # Module hyper-params: in_channels=4, out_channels=8, kernel_size=3, dropout=0.0
    N, C_IN, C_OUT, H, W, K = 2, 4, 8, 16, 16, 3

    key = jax.random.PRNGKey(0)
    kx, kw1, kb1, kw2, kb2 = jax.random.split(key, 5)

    x = jax.random.normal(kx, (N, C_IN, H, W), jnp.float32)  # NCHW (torch-style)

    # Conv weights stored as HWIO = (k, k, Cin, Cout); biases/BN params as (1, Cout).
    w1 = jax.random.normal(kw1, (K, K, C_IN, C_OUT), jnp.float32) * 0.1
    b1 = jax.random.normal(kb1, (1, C_OUT), jnp.float32) * 0.1
    w2 = jax.random.normal(kw2, (K, K, C_OUT, C_OUT), jnp.float32) * 0.1
    b2 = jax.random.normal(kb2, (1, C_OUT), jnp.float32) * 0.1
    gamma1 = jnp.ones((1, C_OUT), jnp.float32)   # BatchNorm2d default weight
    beta1 = jnp.zeros((1, C_OUT), jnp.float32)   # BatchNorm2d default bias
    gamma2 = jnp.ones((1, C_OUT), jnp.float32)
    beta2 = jnp.zeros((1, C_OUT), jnp.float32)

    params = [(w1, b1, gamma1, beta1), (w2, b2, gamma2, beta2)]

    fwd = jax.jit(functools.partial(convolution_block, kernel_size=K, dropout_rate=0.0))
    out = jax.block_until_ready(fwd(x, params))

    ref = _ref_block(x, params)
    assert out.shape == (N, C_OUT, H, W), out.shape
    max_err = float(jnp.max(jnp.abs(out - ref)))
    assert jnp.allclose(out, ref, atol=1e-3, rtol=1e-3), max_err

    print("KERNEL_OK")
</pallas_src>

<mosaic_0001>
module attributes {stable_mosaic.version = 11 : i64} {
  func.func @_fused_block_kernel(%arg0: memref<32x64xf32, #tpu.memory_space<vmem>>, %arg1: memref<3x64x128xf32, #tpu.memory_space<vmem>>, %arg2: memref<3x128x128xf32, #tpu.memory_space<vmem>>, %arg3: memref<1x8xf32, #tpu.memory_space<vmem>>, %arg4: memref<1x8xf32, #tpu.memory_space<vmem>>, %arg5: memref<1x8xf32, #tpu.memory_space<vmem>>, %arg6: memref<1x8xf32, #tpu.memory_space<vmem>>, %arg7: memref<32x128xf32, #tpu.memory_space<vmem>>) attributes {dimension_semantics = [], scalar_prefetch = 0 : i64, scratch_operands = 0 : i64, tpu.core_type = #tpu.core_type<tc>} {
    %0 = tpu.iota {dimensions = array<i32: 0>} : vector<32x32xi32>
    %1 = tpu.iota {dimensions = array<i32: 1>} : vector<32x32xi32>
    %c1_i32 = arith.constant 1 : i32
    %2 = vector.broadcast %c1_i32 : i32 to vector<32x32xi32>
    %3 = arith.subi %0, %2 : vector<32x32xi32>
    %4 = arith.cmpi eq, %1, %3 : vector<32x32xi32>
    %c16_i32 = arith.constant 16 : i32
    %c0_i32 = arith.constant 0 : i32
    %5 = arith.cmpi eq, %c16_i32, %c0_i32 : i32
    %c1_i32_0 = arith.constant 1 : i32
    %6 = arith.select %5, %c1_i32_0, %c16_i32 : i32
    %7 = vector.broadcast %6 : i32 to vector<32x32xi32>
    %8 = arith.remsi %0, %7 : vector<32x32xi32>
    %c0_i32_1 = arith.constant 0 : i32
    %9 = vector.broadcast %c0_i32_1 : i32 to vector<32x32xi32>
    %10 = arith.cmpi ne, %8, %9 : vector<32x32xi32>
    %c0_i32_2 = arith.constant 0 : i32
    %11 = vector.broadcast %c0_i32_2 : i32 to vector<32x32xi32>
    %12 = arith.cmpi slt, %8, %11 : vector<32x32xi32>
    %c0_i32_3 = arith.constant 0 : i32
    %13 = arith.cmpi slt, %6, %c0_i32_3 : i32
    %14 = vector.broadcast %13 : i1 to vector<32x32xi1>
    %15 = vector.broadcast %14 : vector<32x32xi1> to vector<32x32xi1>
    %16 = arith.xori %12, %15 : vector<32x32xi1>
    %17 = arith.andi %16, %10 : vector<32x32xi1>
    %18 = vector.broadcast %6 : i32 to vector<32x32xi32>
    %19 = arith.addi %8, %18 : vector<32x32xi32>
    %20 = arith.select %17, %19, %8 : vector<32x32xi1>, vector<32x32xi32>
    %c0_i32_4 = arith.constant 0 : i32
    %21 = vector.broadcast %c0_i32_4 : i32 to vector<32x32xi32>
    %22 = arith.cmpi ne, %20, %21 : vector<32x32xi32>
    %23 = arith.andi %4, %22 : vector<32x32xi1>
    %24 = arith.extui %23 : vector<32x32xi1> to vector<32x32xi32>
    %25 = arith.sitofp %24 : vector<32x32xi32> to vector<32x32xf32>
    %c1_i32_5 = arith.constant 1 : i32
    %26 = vector.broadcast %c1_i32_5 : i32 to vector<32x32xi32>
    %27 = arith.addi %0, %26 : vector<32x32xi32>
    %28 = arith.cmpi eq, %1, %27 : vector<32x32xi32>
    %c16_i32_6 = arith.constant 16 : i32
    %c0_i32_7 = arith.constant 0 : i32
    %29 = arith.cmpi eq, %c16_i32_6, %c0_i32_7 : i32
    %c1_i32_8 = arith.constant 1 : i32
    %30 = arith.select %29, %c1_i32_8, %c16_i32_6 : i32
    %31 = vector.broadcast %30 : i32 to vector<32x32xi32>
    %32 = arith.remsi %0, %31 : vector<32x32xi32>
    %c0_i32_9 = arith.constant 0 : i32
    %33 = vector.broadcast %c0_i32_9 : i32 to vector<32x32xi32>
    %34 = arith.cmpi ne, %32, %33 : vector<32x32xi32>
    %c0_i32_10 = arith.constant 0 : i32
    %35 = vector.broadcast %c0_i32_10 : i32 to vector<32x32xi32>
    %36 = arith.cmpi slt, %32, %35 : vector<32x32xi32>
    %c0_i32_11 = arith.constant 0 : i32
    %37 = arith.cmpi slt, %30, %c0_i32_11 : i32
    %38 = vector.broadcast %37 : i1 to vector<32x32xi1>
    %39 = vector.broadcast %38 : vector<32x32xi1> to vector<32x32xi1>
    %40 = arith.xori %36, %39 : vector<32x32xi1>
    %41 = arith.andi %40, %34 : vector<32x32xi1>
    %42 = vector.broadcast %30 : i32 to vector<32x32xi32>
    %43 = arith.addi %32, %42 : vector<32x32xi32>
    %44 = arith.select %41, %43, %32 : vector<32x32xi1>, vector<32x32xi32>
    %c15_i32 = arith.constant 15 : i32
    %45 = vector.broadcast %c15_i32 : i32 to vector<32x32xi32>
    %46 = arith.cmpi ne, %44, %45 : vector<32x32xi32>
    %47 = arith.andi %28, %46 : vector<32x32xi1>
    %48 = arith.extui %47 : vector<32x32xi1> to vector<32x32xi32>
    %49 = arith.sitofp %48 : vector<32x32xi32> to vector<32x32xf32>
    %50 = tpu.iota {dimensions = array<i32: 0>} : vector<128x8xi32>
    %51 = tpu.iota {dimensions = array<i32: 1>} : vector<128x8xi32>
    %c8_i32 = arith.constant 8 : i32
    %c0_i32_12 = arith.constant 0 : i32
    %52 = arith.cmpi eq, %c8_i32, %c0_i32_12 : i32
    %c1_i32_13 = arith.constant 1 : i32
    %53 = arith.select %52, %c1_i32_13, %c8_i32 : i32
    %54 = vector.broadcast %53 : i32 to vector<128x8xi32>
    %55 = arith.remsi %50, %54 : vector<128x8xi32>
    %c0_i32_14 = arith.constant 0 : i32
    %56 = vector.broadcast %c0_i32_14 : i32 to vector<128x8xi32>
    %57 = arith.cmpi ne, %55, %56 : vector<128x8xi32>
    %c0_i32_15 = arith.constant 0 : i32
    %58 = vector.broadcast %c0_i32_15 : i32 to vector<128x8xi32>
    %59 = arith.cmpi slt, %55, %58 : vector<128x8xi32>
    %c0_i32_16 = arith.constant 0 : i32
    %60 = arith.cmpi slt, %53, %c0_i32_16 : i32
    %61 = vector.broadcast %60 : i1 to vector<128x8xi1>
    %62 = vector.broadcast %61 : vector<128x8xi1> to vector<128x8xi1>
    %63 = arith.xori %59, %62 : vector<128x8xi1>
    %64 = arith.andi %63, %57 : vector<128x8xi1>
    %65 = vector.broadcast %53 : i32 to vector<128x8xi32>
    %66 = arith.addi %55, %65 : vector<128x8xi32>
    %67 = arith.select %64, %66, %55 : vector<128x8xi1>, vector<128x8xi32>
    %68 = arith.cmpi eq, %67, %51 : vector<128x8xi32>
    %69 = arith.extui %68 : vector<128x8xi1> to vector<128x8xi32>
    %70 = arith.sitofp %69 : vector<128x8xi32> to vector<128x8xf32>
    %71 = tpu.iota {dimensions = array<i32: 1>} : vector<8x128xi32>
    %72 = tpu.iota {dimensions = array<i32: 0>} : vector<8x128xi32>
    %c8_i32_17 = arith.constant 8 : i32
    %c0_i32_18 = arith.constant 0 : i32
    %73 = arith.cmpi eq, %c8_i32_17, %c0_i32_18 : i32
    %c1_i32_19 = arith.constant 1 : i32
    %74 = arith.select %73, %c1_i32_19, %c8_i32_17 : i32
    %75 = vector.broadcast %74 : i32 to vector<8x128xi32>
    %76 = arith.remsi %71, %75 : vector<8x128xi32>
    %c0_i32_20 = arith.constant 0 : i32
    %77 = vector.broadcast %c0_i32_20 : i32 to vector<8x128xi32>
    %78 = arith.cmpi ne, %76, %77 : vector<8x128xi32>
    %c0_i32_21 = arith.constant 0 : i32
    %79 = vector.broadcast %c0_i32_21 : i32 to vector<8x128xi32>
    %80 = arith.cmpi slt, %76, %79 : vector<8x128xi32>
    %c0_i32_22 = arith.constant 0 : i32
    %81 = arith.cmpi slt, %74, %c0_i32_22 : i32
    %82 = vector.broadcast %81 : i1 to vector<8x128xi1>
    %83 = vector.broadcast %82 : vector<8x128xi1> to vector<8x128xi1>
    %84 = arith.xori %80, %83 : vector<8x128xi1>
    %85 = arith.andi %84, %78 : vector<8x128xi1>
    %86 = vector.broadcast %74 : i32 to vector<8x128xi32>
    %87 = arith.addi %76, %86 : vector<8x128xi32>
    %88 = arith.select %85, %87, %76 : vector<8x128xi1>, vector<8x128xi32>
    %89 = arith.cmpi eq, %88, %72 : vector<8x128xi32>
    %90 = arith.extui %89 : vector<8x128xi1> to vector<8x128xi32>
    %91 = arith.sitofp %90 : vector<8x128xi32> to vector<8x128xf32>
    %c0 = arith.constant 0 : index
    %c0_23 = arith.constant 0 : index
    %92 = vector.load %arg0[%c0, %c0_23] : memref<32x64xf32, #tpu.memory_space<vmem>>, vector<32x64xf32>
    %cst = arith.constant 0.000000e+00 : f32
    %93 = vector.broadcast %cst : f32 to vector<32x128xf32>
    %cst_24 = arith.constant dense<0.000000e+00> : vector<32x64xf32>
    %94 = tpu.matmul %25, %92, %cst_24 {dimension_numbers = #tpu.dot_dimension_numbers<[1], [0], [0], [1], [0, 0, 1, 1], [], []>} : vector<32x32xf32>, vector<32x64xf32>, vector<32x64xf32> -> vector<32x64xf32>
    %c0_25 = arith.constant 0 : index
    %c0_26 = arith.constant 0 : index
    %c0_27 = arith.constant 0 : index
    %95 = vector.load %arg1[%c0_25, %c0_26, %c0_27] : memref<3x64x128xf32, #tpu.memory_space<vmem>>, vector<1x64x128xf32>
    %96 = vector.shape_cast %95 : vector<1x64x128xf32> to vector<64x128xf32>
    %cst_28 = arith.constant dense<0.000000e+00> : vector<32x128xf32>
    %97 = tpu.matmul %94, %96, %cst_28 {dimension_numbers = #tpu.dot_dimension_numbers<[1], [0], [0], [1], [0, 0, 1, 1], [], []>} : vector<32x64xf32>, vector<64x128xf32>, vector<32x128xf32> -> vector<32x128xf32>
    %98 = arith.addf %93, %97 : vector<32x128xf32>
    %c1 = arith.constant 1 : index
    %c0_29 = arith.constant 0 : index
    %c0_30 = arith.constant 0 : index
    %99 = vector.load %arg1[%c1, %c0_29, %c0_30] : memref<3x64x128xf32, #tpu.memory_space<vmem>>, vector<1x64x128xf32>
    %100 = vector.shape_cast %99 : vector<1x64x128xf32> to vector<64x128xf32>
    %cst_31 = arith.constant dense<0.000000e+00> : vector<32x128xf32>
    %101 = tpu.matmul %92, %100, %cst_31 {dimension_numbers = #tpu.dot_dimension_numbers<[1], [0], [0], [1], [0, 0, 1, 1], [], []>} : vector<32x64xf32>, vector<64x128xf32>, vector<32x128xf32> -> vector<32x128xf32>
    %102 = arith.addf %98, %101 : vector<32x128xf32>
    %cst_32 = arith.constant dense<0.000000e+00> : vector<32x64xf32>
    %103 = tpu.matmul %49, %92, %cst_32 {dimension_numbers = #tpu.dot_dimension_numbers<[1], [0], [0], [1], [0, 0, 1, 1], [], []>} : vector<32x32xf32>, vector<32x64xf32>, vector<32x64xf32> -> vector<32x64xf32>
    %c2 = arith.constant 2 : index
    %c0_33 = arith.constant 0 : index
    %c0_34 = arith.constant 0 : index
    %104 = vector.load %arg1[%c2, %c0_33, %c0_34] : memref<3x64x128xf32, #tpu.memory_space<vmem>>, vector<1x64x128xf32>
    %105 = vector.shape_cast %104 : vector<1x64x128xf32> to vector<64x128xf32>
    %cst_35 = arith.constant dense<0.000000e+00> : vector<32x128xf32>
    %106 = tpu.matmul %103, %105, %cst_35 {dimension_numbers = #tpu.dot_dimension_numbers<[1], [0], [0], [1], [0, 0, 1, 1], [], []>} : vector<32x64xf32>, vector<64x128xf32>, vector<32x128xf32> -> vector<32x128xf32>
    %107 = arith.addf %102, %106 : vector<32x128xf32>
    %cst_36 = arith.constant dense<0.000000e+00> : vector<128xf32>
    %108 = vector.multi_reduction <add>, %107, %cst_36 [0] : vector<32x128xf32> to vector<128xf32>
    %109 = vector.shape_cast %108 : vector<128xf32> to vector<1x128xf32>
    %110 = arith.mulf %107, %107 : vector<32x128xf32>
    %cst_37 = arith.constant dense<0.000000e+00> : vector<128xf32>
    %111 = vector.multi_reduction <add>, %110, %cst_37 [0] : vector<32x128xf32> to vector<128xf32>
    %112 = vector.shape_cast %111 : vector<128xf32> to vector<1x128xf32>
    %cst_38 = arith.constant dense<0.000000e+00> : vector<1x8xf32>
    %113 = tpu.matmul %109, %70, %cst_38 {dimension_numbers = #tpu.dot_dimension_numbers<[1], [0], [0], [1], [0, 0, 1, 1], [], []>} : vector<1x128xf32>, vector<128x8xf32>, vector<1x8xf32> -> vector<1x8xf32>
    %cst_39 = arith.constant 5.120000e+02 : f32
    %114 = vector.broadcast %cst_39 : f32 to vector<1x8xf32>
    %115 = arith.divf %113, %114 : vector<1x8xf32>
    %cst_40 = arith.constant dense<0.000000e+00> : vector<1x8xf32>
    %116 = tpu.matmul %112, %70, %cst_40 {dimension_numbers = #tpu.dot_dimension_numbers<[1], [0], [0], [1], [0, 0, 1, 1], [], []>} : vector<1x128xf32>, vector<128x8xf32>, vector<1x8xf32> -> vector<1x8xf32>
    %cst_41 = arith.constant 5.120000e+02 : f32
    %117 = vector.broadcast %cst_41 : f32 to vector<1x8xf32>
    %118 = arith.divf %116, %117 : vector<1x8xf32>
    %119 = arith.mulf %115, %115 : vector<1x8xf32>
    %120 = arith.subf %118, %119 : vector<1x8xf32>
    %c0_42 = arith.constant 0 : index
    %c0_43 = arith.constant 0 : index
    %121 = vector.load %arg3[%c0_42, %c0_43] : memref<1x8xf32, #tpu.memory_space<vmem>>, vector<1x8xf32>
    %cst_44 = arith.constant 9.99999974E-6 : f32
    %122 = vector.broadcast %cst_44 : f32 to vector<1x8xf32>
    %123 = arith.addf %120, %122 : vector<1x8xf32>
    %124 = math.rsqrt %123 : vector<1x8xf32>
    %125 = arith.mulf %121, %124 : vector<1x8xf32>
    %c0_45 = arith.constant 0 : index
    %c0_46 = arith.constant 0 : index
    %126 = vector.load %arg4[%c0_45, %c0_46] : memref<1x8xf32, #tpu.memory_space<vmem>>, vector<1x8xf32>
    %127 = arith.mulf %115, %125 : vector<1x8xf32>
    %128 = arith.subf %126, %127 : vector<1x8xf32>
    %cst_47 = arith.constant dense<0.000000e+00> : vector<1x128xf32>
    %129 = tpu.matmul %125, %91, %cst_47 {dimension_numbers = #tpu.dot_dimension_numbers<[1], [0], [0], [1], [0, 0, 1, 1], [], []>} : vector<1x8xf32>, vector<8x128xf32>, vector<1x128xf32> -> vector<1x128xf32>
    %cst_48 = arith.constant dense<0.000000e+00> : vector<1x128xf32>
    %130 = tpu.matmul %128, %91, %cst_48 {dimension_numbers = #tpu.dot_dimension_numbers<[1], [0], [0], [1], [0, 0, 1, 1], [], []>} : vector<1x8xf32>, vector<8x128xf32>, vector<1x128xf32> -> vector<1x128xf32>
    %131 = vector.broadcast %129 : vector<1x128xf32> to vector<32x128xf32>
    %132 = arith.mulf %107, %131 : vector<32x128xf32>
    %133 = vector.broadcast %130 : vector<1x128xf32> to vector<32x128xf32>
    %134 = arith.addf %132, %133 : vector<32x128xf32>
    %cst_49 = arith.constant 0.000000e+00 : f32
    %135 = vector.broadcast %cst_49 : f32 to vector<32x128xf32>
    %136 = arith.maximumf %134, %135 : vector<32x128xf32>
    %cst_50 = arith.constant 0.000000e+00 : f32
    %137 = vector.broadcast %cst_50 : f32 to vector<32x128xf32>
    %cst_51 = arith.constant dense<0.000000e+00> : vector<32x128xf32>
    %138 = tpu.matmul %25, %136, %cst_51 {dimension_numbers = #tpu.dot_dimension_numbers<[1], [0], [0], [1], [0, 0, 1, 1], [], []>} : vector<32x32xf32>, vector<32x128xf32>, vector<32x128xf32> -> vector<32x128xf32>
    %c0_52 = arith.constant 0 : index
    %c0_53 = arith.constant 0 : index
    %c0_54 = arith.constant 0 : index
    %139 = vector.load %arg2[%c0_52, %c0_53, %c0_54] : memref<3x128x128xf32, #tpu.memory_space<vmem>>, vector<1x128x128xf32>
    %140 = vector.shape_cast %139 : vector<1x128x128xf32> to vector<128x128xf32>
    %cst_55 = arith.constant dense<0.000000e+00> : vector<32x128xf32>
    %141 = tpu.matmul %138, %140, %cst_55 {dimension_numbers = #tpu.dot_dimension_numbers<[1], [0], [0], [1], [0, 0, 1, 1], [], []>} : vector<32x128xf32>, vector<128x128xf32>, vector<32x128xf32> -> vector<32x128xf32>
    %142 = arith.addf %137, %141 : vector<32x128xf32>
    %c1_56 = arith.constant 1 : index
    %c0_57 = arith.constant 0 : index
    %c0_58 = arith.constant 0 : index
    %143 = vector.load %arg2[%c1_56, %c0_57, %c0_58] : memref<3x128x128xf32, #tpu.memory_space<vmem>>, vector<1x128x128xf32>
    %144 = vector.shape_cast %143 : vector<1x128x128xf32> to vector<128x128xf32>
    %cst_59 = arith.constant dense<0.000000e+00> : vector<32x128xf32>
    %145 = tpu.matmul %136, %144, %cst_59 {dimension_numbers = #tpu.dot_dimension_numbers<[1], [0], [0], [1], [0, 0, 1, 1], [], []>} : vector<32x128xf32>, vector<128x128xf32>, vector<32x128xf32> -> vector<32x128xf32>
    %146 = arith.addf %142, %145 : vector<32x128xf32>
    %cst_60 = arith.constant dense<0.000000e+00> : vector<32x128xf32>
    %147 = tpu.matmul %49, %136, %cst_60 {dimension_numbers = #tpu.dot_dimension_numbers<[1], [0], [0], [1], [0, 0, 1, 1], [], []>} : vector<32x32xf32>, vector<32x128xf32>, vector<32x128xf32> -> vector<32x128xf32>
    %c2_61 = arith.constant 2 : index
    %c0_62 = arith.constant 0 : index
    %c0_63 = arith.constant 0 : index
    %148 = vector.load %arg2[%c2_61, %c0_62, %c0_63] : memref<3x128x128xf32, #tpu.memory_space<vmem>>, vector<1x128x128xf32>
    %149 = vector.shape_cast %148 : vector<1x128x128xf32> to vector<128x128xf32>
    %cst_64 = arith.constant dense<0.000000e+00> : vector<32x128xf32>
    %150 = tpu.matmul %147, %149, %cst_64 {dimension_numbers = #tpu.dot_dimension_numbers<[1], [0], [0], [1], [0, 0, 1, 1], [], []>} : vector<32x128xf32>, vector<128x128xf32>, vector<32x128xf32> -> vector<32x128xf32>
    %151 = arith.addf %146, %150 : vector<32x128xf32>
    %cst_65 = arith.constant dense<0.000000e+00> : vector<128xf32>
    %152 = vector.multi_reduction <add>, %151, %cst_65 [0] : vector<32x128xf32> to vector<128xf32>
    %153 = vector.shape_cast %152 : vector<128xf32> to vector<1x128xf32>
    %154 = arith.mulf %151, %151 : vector<32x128xf32>
    %cst_66 = arith.constant dense<0.000000e+00> : vector<128xf32>
    %155 = vector.multi_reduction <add>, %154, %cst_66 [0] : vector<32x128xf32> to vector<128xf32>
    %156 = vector.shape_cast %155 : vector<128xf32> to vector<1x128xf32>
    %cst_67 = arith.constant dense<0.000000e+00> : vector<1x8xf32>
    %157 = tpu.matmul %153, %70, %cst_67 {dimension_numbers = #tpu.dot_dimension_numbers<[1], [0], [0], [1], [0, 0, 1, 1], [], []>} : vector<1x128xf32>, vector<128x8xf32>, vector<1x8xf32> -> vector<1x8xf32>
    %cst_68 = arith.constant 5.120000e+02 : f32
    %158 = vector.broadcast %cst_68 : f32 to vector<1x8xf32>
    %159 = arith.divf %157, %158 : vector<1x8xf32>
    %cst_69 = arith.constant dense<0.000000e+00> : vector<1x8xf32>
    %160 = tpu.matmul %156, %70, %cst_69 {dimension_numbers = #tpu.dot_dimension_numbers<[1], [0], [0], [1], [0, 0, 1, 1], [], []>} : vector<1x128xf32>, vector<128x8xf32>, vector<1x8xf32> -> vector<1x8xf32>
    %cst_70 = arith.constant 5.120000e+02 : f32
    %161 = vector.broadcast %cst_70 : f32 to vector<1x8xf32>
    %162 = arith.divf %160, %161 : vector<1x8xf32>
    %163 = arith.mulf %159, %159 : vector<1x8xf32>
    %164 = arith.subf %162, %163 : vector<1x8xf32>
    %c0_71 = arith.constant 0 : index
    %c0_72 = arith.constant 0 : index
    %165 = vector.load %arg5[%c0_71, %c0_72] : memref<1x8xf32, #tpu.memory_space<vmem>>, vector<1x8xf32>
    %cst_73 = arith.constant 9.99999974E-6 : f32
    %166 = vector.broadcast %cst_73 : f32 to vector<1x8xf32>
    %167 = arith.addf %164, %166 : vector<1x8xf32>
    %168 = math.rsqrt %167 : vector<1x8xf32>
    %169 = arith.mulf %165, %168 : vector<1x8xf32>
    %c0_74 = arith.constant 0 : index
    %c0_75 = arith.constant 0 : index
    %170 = vector.load %arg6[%c0_74, %c0_75] : memref<1x8xf32, #tpu.memory_space<vmem>>, vector<1x8xf32>
    %171 = arith.mulf %159, %169 : vector<1x8xf32>
    %172 = arith.subf %170, %171 : vector<1x8xf32>
    %cst_76 = arith.constant dense<0.000000e+00> : vector<1x128xf32>
    %173 = tpu.matmul %169, %91, %cst_76 {dimension_numbers = #tpu.dot_dimension_numbers<[1], [0], [0], [1], [0, 0, 1, 1], [], []>} : vector<1x8xf32>, vector<8x128xf32>, vector<1x128xf32> -> vector<1x128xf32>
    %cst_77 = arith.constant dense<0.000000e+00> : vector<1x128xf32>
    %174 = tpu.matmul %172, %91, %cst_77 {dimension_numbers = #tpu.dot_dimension_numbers<[1], [0], [0], [1], [0, 0, 1, 1], [], []>} : vector<1x8xf32>, vector<8x128xf32>, vector<1x128xf32> -> vector<1x128xf32>
    %175 = vector.broadcast %173 : vector<1x128xf32> to vector<32x128xf32>
    %176 = arith.mulf %151, %175 : vector<32x128xf32>
    %177 = vector.broadcast %174 : vector<1x128xf32> to vector<32x128xf32>
    %178 = arith.addf %176, %177 : vector<32x128xf32>
    %cst_78 = arith.constant 0.000000e+00 : f32
    %179 = vector.broadcast %cst_78 : f32 to vector<32x128xf32>
    %180 = arith.maximumf %178, %179 : vector<32x128xf32>
    %c0_79 = arith.constant 0 : index
    %c0_80 = arith.constant 0 : index
    %181 = vector.load %arg7[%c0_79, %c0_80] : memref<32x128xf32, #tpu.memory_space<vmem>>, vector<32x128xf32>
    tpu.vector_store %arg7[%c0_79, %c0_80], %180 {strides = array<i32>} : memref<32x128xf32, #tpu.memory_space<vmem>>, vector<32x128xf32>,
    return
  }
}

</mosaic_0001>

<bundles_post_ra>
// kernel: convolution_block.1
= control target key start
LH: loop header
LB: loop body
LE: loop exit
PB: predicated region body
PF: predicated region fallthrough
CT: control target
= control target key end

     0   :  { %v26_v0 = vlaneseq  ;;  %vm3749_vm0 = vcmask 261120   ;;  %v2868_v20 = vmov 0.0   ;;  %vm515_vm9 = vcmask 523264   ;;  %s3741_s0 = inlined_call_operand.vmem [shape: f32[32,64], index: 0, kind: input, shape index: {}]   ;;  %s3742_s1 = inlined_call_operand.vmem [shape: f32[3,64,128], index: 1, kind: input, shape index: {}]   ;;  %s3743_s2 = inlined_call_operand.vmem [shape: f32[3,128,128], index: 2, kind: input, shape index: {}]   ;;  %s3744_s3 = inlined_call_operand.vmem [shape: f32[1,8], index: 3, kind: input, shape index: {}]   ;;  %s3745_s4 = inlined_call_operand.vmem [shape: f32[1,8], index: 4, kind: input, shape index: {}]   ;;  %s3746_s5 = inlined_call_operand.vmem [shape: f32[1,8], index: 5, kind: input, shape index: {}]   ;;  %s3747_s6 = inlined_call_operand.vmem [shape: f32[1,8], index: 6, kind: input, shape index: {}]   ;;  %s3748_s7 = inlined_call_operand.vmem [shape: f32[32,128], index: 7, kind: output, shape index: {}]  }
   0x1   :  { %v2914_v1 = vld [vmem:[%s3741_s0 + $0x18] sm:$0xff]  ;;  %v2919_v2 = vld [vmem:[%s3741_s0 + $0x10] sm:$0xff]  ;;  %v2933_v6 = vld [vmem:[%s3741_s0 + $0x8] sm:$0xff] }
   0x2   :  { %2465 = vmatprep.subr.mxu0 %v2914_v1  ;;  %v2922_v3 = vshrl.u32 %v26_v0, 7  ;;  %v2924_v4 = vand.u32 127, %v26_v0  ;;  %v2124_v5 = vld [vmem:[%s3742_s1 + $0x78] sm:$0xff]  ;;  %v2123_v7 = vld [vmem:[%s3742_s1 + $0x70] sm:$0xff]  ;;  %v2122_v12 = vld [vmem:[%s3742_s1 + $0x68] sm:$0xff] }
   0x3   :  { %2466 = vmatpush3.msra.mxu0 %v2914_v1  ;;  %2479 = vmatprep.subr.mxu1 %v2124_v5  ;;  %v2954_v13 = vld [vmem:[%s3741_s0] sm:$0xff]  ;;  %v505_v19 = vld [vmem:[%s3742_s1 + $0x38] sm:$0xff]  ;;  %v504_v24 = vld [vmem:[%s3742_s1 + $0x30] sm:$0xff] }
   0x4   :  { %2467 = vmatprep.subr.mxu0 %v2919_v2  ;;  %v2084_v8 = vadd.s32 4294967295, %v2922_v3  ;;  %v45_v9 = vand.u32 15, %v2922_v3  ;;  %v2942_v10 = vadd.s32 8, %v2922_v3  ;;  %v2945_v11 = vadd.s32 16, %v2922_v3  ;;  %2480 = vmatpush3.msra.mxu1 %v2124_v5  ;;  %v2121_v22 = vld [vmem:[%s3742_s1 + $0x60] sm:$0xff]  ;;  %v503_v27 = vld [vmem:[%s3742_s1 + $0x28] sm:$0xff] }
   0x5   :  { %2468 = vmatpush3.msra.mxu0 %v2919_v2  ;;  %v2957_v14 = vadd.s32 24, %v2922_v3  ;;  %2481 = vmatprep.subr.mxu1 %v2123_v7  ;;  %v2120_v28 = vld [vmem:[%s3742_s1 + $0x58] sm:$0xff]  ;;  %v502_v29 = vld [vmem:[%s3742_s1 + $0x20] sm:$0xff]  ;;  %v2119_v30 = vld [vmem:[%s3742_s1 + $0x50] sm:$0xff]  ;;  %v105_v37 = vadd.s32 1, %v2922_v3  ;;  %v140_v59 = vadd.s32 120, %v2922_v3 }
   0x6   :  { %2469 = vmatprep.subr.mxu0 %v2933_v6  ;;  %vm37_vm1 = vcmp.eq.s32.totalorder %v2924_v4, %v2084_v8  ;;  %vm89_vm2 = vcmp.ne.s32.totalorder %v45_v9, 0  ;;  %v2085_v15 = vadd.s32 4294967295, %v2942_v10  ;;  %v2086_v16 = vadd.s32 4294967295, %v2945_v11  ;;  %2482 = vmatpush3.msra.mxu1 %v2123_v7  ;;  %v501_v31 = vld [vmem:[%s3742_s1 + $0x18] sm:$0xff]  ;;  %v500_v32 = vld [vmem:[%s3742_s1 + $0x10] sm:$0xff]  ;;  %v499_v33 = vld [vmem:[%s3742_s1 + $0x8] sm:$0xff] }
   0x7   :  { %2470 = vmatpush3.msra.mxu0 %v2933_v6  ;;  %vm93_vm3 = vmand %vm37_vm1, %vm89_vm2  ;;  %v59_v17 = vand.u32 15, %v2945_v11  ;;  %v2087_v18 = vadd.s32 4294967295, %v2957_v14  ;;  %2483 = vmatprep.subr.mxu1 %v2122_v12  ;;  %v2118_v34 = vld [vmem:[%s3742_s1 + $0x48] sm:$0xff]  ;;  %v498_v35 = vld [vmem:[%s3742_s1] sm:$0xff]  ;;  %v106_v38 = vadd.s32 1, %v2942_v10  ;;  %v52_v39 = vand.u32 15, %v2942_v10 }
   0x8   :  { %2471 = vmatprep.subr.mxu0 %v2954_v13  ;;  %v2971_v21 = vsel %vm93_vm3, 1.0, %v2868_v20  ;;  %vm38_vm4 = vcmp.eq.s32.totalorder %v2924_v4, %v2085_v15  ;;  %vm39_vm5 = vcmp.eq.s32.totalorder %v2924_v4, %v2086_v16  ;;  %2484 = vmatpush3.msra.mxu1 %v2122_v12  ;;  %v2117_v36 = vld [vmem:[%s3742_s1 + $0x40] sm:$0xff]  ;;  %vm109_vm10 = vcmp.eq.s32.totalorder %v2924_v4, %v105_v37  ;;  %v2144_v49 = vld [vmem:[%s3742_s1 + $0xb8] sm:$0xff]  ;;  %v2143_v51 = vld [vmem:[%s3742_s1 + $0xb0] sm:$0xff] }
   0x9   :  { %2472 = vmatpush3.msra.mxu0 %v2954_v13  ;;  %2473 = vmatprep.mubr.msk.f32.mxu0 %vm3749_vm0, %v2971_v21  ;;  %v2982_v23 = vsel %vm38_vm4, 1.0, %v2868_v20  ;;  %vm91_vm6 = vcmp.ne.s32.totalorder %v59_v17, 0  ;;  %vm40_vm7 = vcmp.eq.s32.totalorder %v2924_v4, %v2087_v18  ;;  %vm110_vm11 = vcmp.eq.s32.totalorder %v2924_v4, %v106_v38  ;;  %v2142_v53 = vld [vmem:[%s3742_s1 + $0xa8] sm:$0xff]  ;;  %v2141_v54 = vld [vmem:[%s3742_s1 + $0xa0] sm:$0xff]  ;;  %v2140_v55 = vld [vmem:[%s3742_s1 + $0x98] sm:$0xff] }
   0xa   :  { %2474 = vmatmul.mubr.msk.f32.vlgmr.msra.gmra.mxu0 %vm3749_vm0, %v2982_v23  ;;  %vm95_vm8 = vmand %vm39_vm5, %vm91_vm6  ;;  %2501 = vmatprep.subr.mxu0 %v505_v19  ;;  %v2994_v26 = vsel %vm40_vm7, 1.0, %v2868_v20  ;;  %vm114_vm12 = vcmp.ne.s32.totalorder %v52_v39, 15  ;;  %v107_v42 = vadd.s32 1, %v2945_v11  ;;  %v66_v43 = vand.u32 15, %v2957_v14  ;;  %v2139_v56 = vld [vmem:[%s3742_s1 + $0x90] sm:$0xff]  ;;  %v2138_v57 = vld [vmem:[%s3742_s1 + $0x88] sm:$0xff] }
   0xb   :  { %v2991_v25 = vsel %vm95_vm8, 1.0, %v2868_v20  ;;  %2502 = vmatpush3.msra.mxu0 %v505_v19  ;;  %2485 = vmatprep.subr.mxu1 %v2121_v22  ;;  %v108_v44 = vadd.s32 1, %v2957_v14  ;;  %v3053_v47 = vsel %vm109_vm10, 1.0, %v2868_v20  ;;  %vm118_vm13 = vmand %vm110_vm11, %vm114_vm12  ;;  %v2137_v58 = vld [vmem:[%s3742_s1 + $0x80] sm:$0xff]  ;;  %v139_v60 = vadd.s32 112, %v2922_v3 }
   0xc   :  { %2476 = vmatprep.mubr.msk.f32.mxu0 %vm3749_vm0, %v2991_v25  ;;  %2503 = vmatprep.subr.mxu0 %v504_v24  ;;  %vm111_vm14 = vcmp.eq.s32.totalorder %v2924_v4, %v107_v42  ;;  %vm116_vm1 = vcmp.ne.s32.totalorder %v66_v43, 15  ;;  %v3065_v48 = vsel %vm118_vm13, 1.0, %v2868_v20  ;;  %v138_v61 = vadd.s32 104, %v2922_v3 }
   0xd   :  { %2504 = vmatpush3.msra.mxu0 %v504_v24  ;;  %2486 = vmatpush3.msra.mxu1 %v2121_v22  ;;  %vm112_vm15 = vcmp.eq.s32.totalorder %v2924_v4, %v108_v44  ;;  %v3072_v50 = vsel %vm111_vm14, 1.0, %v2868_v20  ;;  %v250_v62 = vand.u32 7, %v140_v59  ;;  %v243_v63 = vand.u32 7, %v139_v60 }
   0xe   :  { %2477 = vmatmul.mubr.msk.f32.gmra.mxu0 %vm3749_vm0, %v2994_v26  ;;  %2505 = vmatprep.subr.mxu0 %v503_v27  ;;  %vm120_vm2 = vmand %vm112_vm15, %vm116_vm1  ;;  %v236_v0 = vand.u32 7, %v138_v61  ;;  %v2869_v5 = vmov 1.0   ;;  %v137_v18 = vadd.s32 96, %v2922_v3  ;;  %v136_v22 = vadd.s32 88, %v2922_v3 }
   0xf   :  { %2506 = vmatpush3.msra.mxu0 %v503_v27  ;;  %2487 = vmatprep.subr.mxu1 %v2120_v28  ;;  %v3083_v52 = vsel %vm120_vm2, 1.0, %v2868_v20  ;;  %vm3110_vm3 = vcmp.eq.s32.totalorder %v250_v62, %v2924_v4  ;;  %vm3115_vm4 = vcmp.eq.s32.totalorder %v243_v63, %v2924_v4  ;;  %v132_v37 = vadd.s32 56, %v2922_v3 }
  0x10   :  { %2507 = vmatprep.subr.mxu0 %v502_v29  ;;  %2488 = vmatpush3.msra.mxu1 %v2120_v28  ;;  %vm3124_vm5 = vcmp.eq.s32.totalorder %v236_v0, %v2924_v4  ;;  %v229_v19 = vand.u32 7, %v137_v18  ;;  %v222_v27 = vand.u32 7, %v136_v22  ;;  %v135_v28 = vadd.s32 80, %v2922_v3 }
  0x11   :  { %2508 = vmatpush3.msra.mxu0 %v502_v29  ;;  %2489 = vmatprep.subr.mxu1 %v2119_v30  ;;  %v194_v39 = vand.u32 7, %v132_v37  ;;  %v130_v43 = vadd.s32 40, %v2922_v3 }
  0x12   :  { %2509 = vmatprep.subr.mxu0 %v501_v31  ;;  %2490 = vmatpush3.msra.mxu1 %v2119_v30  ;;  %vm3163_vm6 = vcmp.eq.s32.totalorder %v229_v19, %v2924_v4  ;;  %vm3176_vm7 = vcmp.eq.s32.totalorder %v222_v27, %v2924_v4  ;;  %v215_v30 = vand.u32 7, %v135_v28 }
  0x13   :  { %2510 = vmatpush3.msra.mxu0 %v501_v31  ;;  %2491 = vmatprep.subr.mxu1 %v2118_v34  ;;  %v134_v31 = vadd.s32 72, %v2922_v3  ;;  %vm3232_vm11 = vcmp.eq.s32.totalorder %v194_v39, %v2924_v4 }
  0x14   :  { %2511 = vmatprep.subr.mxu0 %v500_v32  ;;  %2492 = vmatpush3.msra.mxu1 %v2118_v34  ;;  %vm3190_vm8 = vcmp.eq.s32.totalorder %v215_v30, %v2924_v4  ;;  %v133_v34 = vadd.s32 64, %v2922_v3 }
  0x15   :  { %2512 = vmatpush3.msra.mxu0 %v500_v32  ;;  %2493 = vmatprep.subr.mxu1 %v2117_v36 }
  0x16   :  { %2513 = vmatprep.subr.mxu0 %v499_v33  ;;  %2494 = vmatpush3.msra.mxu1 %v2117_v36  ;;  %v201_v36 = vand.u32 7, %v133_v34 }
  0x17   :  { %2514 = vmatpush3.msra.mxu0 %v499_v33  ;;  %2495 = vmatprep.mubr.msk.f32.mxu1 %vm515_vm9, %v2954_v13  ;;  %v208_v33 = vand.u32 7, %v134_v31 }
  0x18   :  { %2515 = vmatprep.subr.mxu0 %v498_v35  ;;  %2496 = vmatmul.mubr.msk.f32.vlgmr.msra.gmra.mxu1 %vm515_vm9, %v2933_v6  ;;  %vm3218_vm10 = vcmp.eq.s32.totalorder %v201_v36, %v2924_v4 }
  0x19   :  { %2516 = vmatpush3.msra.mxu0 %v498_v35  ;;  %2498 = vmatprep.mubr.msk.f32.mxu1 %vm515_vm9, %v2919_v2 }
  0x1a   :  { %2523 = vmatprep.subr.mxu0 %v2914_v1  ;;  %2559 = vmatprep.subr.mxu1 %v2868_v20 }
  0x1b   :  { %2560 = vmatpush3.msk.msra.mxu1 %vm3110_vm3, %v2869_v5 }
  0x1c   :  { %2499 = vmatmul.mubr.msk.f32.gmra.mxu1 %vm515_vm9, %v2914_v1  ;;  %2561 = vmatprep.subr.mxu1 %v2868_v20 }
  0x1d   :  { %2562 = vmatpush3.msk.msra.mxu1 %vm3115_vm4, %v2869_v5 }
  0x1e   :  { %2563 = vmatprep.subr.mxu1 %v2868_v20 }
  0x1f   :  { %2564 = vmatpush3.msk.msra.mxu1 %vm3124_vm5, %v2869_v5 }
  0x20   :  { %2565 = vmatprep.subr.mxu1 %v2868_v20 }
  0x21   :  { %2566 = vmatpush3.msk.msra.mxu1 %vm3163_vm6, %v2869_v5 }
  0x22   :  { %2567 = vmatprep.subr.mxu1 %v2868_v20 }
  0x23   :  { %2568 = vmatpush3.msk.msra.mxu1 %vm3176_vm7, %v2869_v5 }
  0x24   :  { %2569 = vmatprep.subr.mxu1 %v2868_v20 }
  0x25   :  { %2570 = vmatpush3.msk.msra.mxu1 %vm3190_vm8, %v2869_v5 }
  0x26   :  { %2571 = vmatprep.subr.mxu1 %v2868_v20 }
  0xca   :  { %v2475_v40 = vpop.f32.mrf.mxu0 }
  0xcc   :  { %v479_v41 = vpop.f32.mrf.mxu0 }
  0xcd   :  { %2517 = vmatprep.mubr.msk.f32.mxu0 %vm515_vm9, %v479_v41 }
  0xce   :  { %v2478_v45 = vpop.f32.mrf.mxu0  ;;  %2518 = vmatmul.mubr.msk.f32.vlgmr.msra.gmra.mxu0 %vm515_vm9, %v2475_v40  ;;  %v131_v40 = vadd.s32 48, %v2922_v3 }
  0xcf   :  { %2524 = vmatpush3.msra.mxu0 %v2914_v1 }
  0xd0   :  { %2525 = vmatprep.subr.mxu0 %v2919_v2  ;;  %v489_v46 = vpop.f32.mrf.mxu0  ;;  %v187_v42 = vand.u32 7, %v131_v40 }
  0xd1   :  { %2526 = vmatpush3.msra.mxu0 %v2919_v2  ;;  %2520 = vmatprep.mubr.msk.f32.mxu0 %vm515_vm9, %v489_v46  ;;  %v129_v46 = vadd.s32 32, %v2922_v3 }
  0xd2   :  { %2527 = vmatprep.subr.mxu0 %v2933_v6  ;;  %2521 = vmatmul.mubr.msk.f32.gmra.mxu0 %vm515_vm9, %v2478_v45  ;;  %vm3246_vm12 = vcmp.eq.s32.totalorder %v187_v42, %v2924_v4  ;;  %v180_v45 = vand.u32 7, %v130_v43 }
  0xd3   :  { %2528 = vmatpush3.msra.mxu0 %v2933_v6  ;;  %2531 = vmatprep.mubr.msk.f32.mxu0 %vm3749_vm0, %v3053_v47 }
  0xd4   :  { %2529 = vmatprep.subr.mxu0 %v2954_v13  ;;  %vm3260_vm13 = vcmp.eq.s32.totalorder %v180_v45, %v2924_v4 }
  0xd5   :  { %2530 = vmatpush3.msra.mxu0 %v2954_v13 }
  0xd6   :  { %2532 = vmatmul.mubr.msk.f32.vlgmr.msra.gmra.mxu0 %vm3749_vm0, %v3065_v48  ;;  %2537 = vmatprep.subr.mxu0 %v2144_v49 }
  0xd7   :  { %2534 = vmatprep.mubr.msk.f32.mxu0 %vm3749_vm0, %v3072_v50  ;;  %2538 = vmatpush3.msra.mxu0 %v2144_v49  ;;  %v3787_v49 = vmov 0 }
  0xd8   :  { %2539 = vmatprep.subr.mxu0 %v2143_v51  ;;  %v3788_v49 = vsel %vm3260_vm13, 4294967295, %v3787_v49  ;;  %v2497_v59 = vpop.f32.mrf.mxu1 }
  0xd9   :  { %2540 = vmatpush3.msra.mxu0 %v2143_v51  ;;  %v173_v51 = vand.u32 7, %v129_v46 }
  0xda   :  { %2535 = vmatmul.mubr.msk.f32.gmra.mxu0 %vm3749_vm0, %v3083_v52  ;;  %2541 = vmatprep.subr.mxu0 %v2142_v53  ;;  %vm3754_vm0 = vmmov 0   ;;  %v594_v60 = vpop.f32.mrf.mxu1 }
  0xdb   :  { %2542 = vmatpush3.msra.mxu0 %v2142_v53  ;;  %vm3273_vm14 = vcmp.eq.s32.totalorder %v173_v51, %v2924_v4  ;;  %v3789_v53 = vmov 0  ;;  %2591 = vmatprep.mubr.msk.f32.mxu1 %vm3754_vm0, %v2868_v20 }
  0xdc   :  { %2543 = vmatprep.subr.mxu0 %v2141_v54  ;;  %v3790_v53 = vsel %vm3273_vm14, 4294967295, %v3789_v53  ;;  %v2500_v61 = vpop.f32.mrf.mxu1 }
  0xdd   :  { %2544 = vmatpush3.msra.mxu0 %v2141_v54  ;;  %v166_v54 = vand.u32 7, %v2957_v14  ;;  %v3793_v14 = vmov 0 }
  0xde   :  { %2545 = vmatprep.subr.mxu0 %v2140_v55 }
  0xdf   :  { %2546 = vmatpush3.msra.mxu0 %v2140_v55  ;;  %vm3287_vm15 = vcmp.eq.s32.totalorder %v166_v54, %v2924_v4  ;;  %v3791_v55 = vmov 0 }
  0xe0   :  { %2547 = vmatprep.subr.mxu0 %v2139_v56  ;;  %v3792_v55 = vsel %vm3287_vm15, 4294967295, %v3791_v55 }
  0xe1   :  { %2548 = vmatpush3.msra.mxu0 %v2139_v56  ;;  %v159_v56 = vand.u32 7, %v2945_v11  ;;  %v3795_v11 = vmov 0 }
  0xe2   :  { %2549 = vmatprep.subr.mxu0 %v2138_v57 }
  0xe3   :  { %2550 = vmatpush3.msra.mxu0 %v2138_v57  ;;  %vm3301_vm1 = vcmp.eq.s32.totalorder %v159_v56, %v2924_v4  ;;  %v152_v57 = vand.u32 7, %v2942_v10  ;;  %v3797_v10 = vmov 0 }
  0xe4   :  { %2551 = vmatprep.subr.mxu0 %v2137_v58  ;;  %v3794_v14 = vsel %vm3301_vm1, 4294967295, %v3793_v14 }
  0xe5   :  { %2552 = vmatpush3.msra.mxu0 %v2137_v58  ;;  %vm3315_vm2 = vcmp.eq.s32.totalorder %v152_v57, %v2924_v4  ;;  %v145_v58 = vand.u32 7, %v2922_v3 }
  0xe6   :  { %2594 = vmatprep.subr.mxu0 %v2868_v20  ;;  %v3796_v11 = vsel %vm3315_vm2, 4294967295, %v3795_v11 }
 0x18e   :  { %v3136_v7 = vpop.f32.mrf.mxu0 }
 0x18f   :  { %v697_v63 = vadd.f32 %v3136_v7, %v2497_v59 }
 0x190   :  { %v3138_v8 = vpop.f32.mrf.mxu0 }
 0x191   :  { %v692_v0 = vadd.f32 %v3138_v8, %v594_v60 }
 0x192   :  { %v3140_v9 = vpop.f32.mrf.mxu0 }
 0x193   :  { %v707_v19 = vadd.f32 %v3140_v9, %v2500_v61  ;;  %v385_v61 = vand.u32 7, %v2924_v4 }
 0x194   :  { %v3142_v12 = vpop.f32.mrf.mxu0 }
 0x196   :  { %v2533_v13 = vpop.f32.mrf.mxu0 }
 0x198   :  { %v788_v15 = vpop.f32.mrf.mxu0 }
 0x199   :  { %2553 = vmatprep.mubr.msk.f32.mxu0 %vm515_vm9, %v788_v15 }
 0x19a   :  { %v2536_v16 = vpop.f32.mrf.mxu0  ;;  %2554 = vmatmul.mubr.msk.f32.vlgmr.msra.gmra.mxu0 %vm515_vm9, %v2533_v13  ;;  %v604_v13 = vpop.f32.mrf.mxu1 }
 0x19b   :  { %2595 = vmatpush3.msk.msra.mxu0 %vm3110_vm3, %v2869_v5  ;;  %v702_v22 = vadd.f32 %v3142_v12, %v604_v13  ;;  %v2201_v13 = vld [vmem:[%s3743_s2 + $0xe0] sm:$0xff] }
 0x19c   :  { %v798_v17 = vpop.f32.mrf.mxu0  ;;  %2596 = vmatprep.subr.mxu0 %v2868_v20 }
 0x19d   :  { %2556 = vmatprep.mubr.msk.f32.mxu0 %vm515_vm9, %v798_v17  ;;  %2597 = vmatpush3.msk.msra.mxu0 %vm3115_vm4, %v2869_v5 }
 0x19e   :  { %2557 = vmatmul.mubr.msk.f32.gmra.mxu0 %vm515_vm9, %v2536_v16  ;;  %2598 = vmatprep.subr.mxu0 %v2868_v20  ;;  %vm3204_vm9 = vcmp.eq.s32.totalorder %v208_v33, %v2924_v4 }
 0x19f   :  { %2599 = vmatpush3.msk.msra.mxu0 %vm3124_vm5, %v2869_v5  ;;  %2572 = vmatpush3.msk.msra.mxu1 %vm3204_vm9, %v2869_v5 }
 0x1a0   :  { %2600 = vmatprep.subr.mxu0 %v2868_v20  ;;  %2573 = vmatprep.subr.mxu1 %v2868_v20 }
 0x1a1   :  { %2601 = vmatpush3.msk.msra.mxu0 %vm3163_vm6, %v2869_v5  ;;  %2574 = vmatpush3.msk.msra.mxu1 %vm3218_vm10, %v2869_v5 }
 0x1a2   :  { %2602 = vmatprep.subr.mxu0 %v2868_v20  ;;  %2575 = vmatprep.subr.mxu1 %v2868_v20 }
 0x1a3   :  { %2603 = vmatpush3.msk.msra.mxu0 %vm3176_vm7, %v2869_v5  ;;  %2576 = vmatpush3.msk.msra.mxu1 %vm3232_vm11, %v2869_v5 }
 0x1a4   :  { %2604 = vmatprep.subr.mxu0 %v2868_v20  ;;  %2577 = vmatprep.subr.mxu1 %v2868_v20 }
 0x1a5   :  { %2605 = vmatpush3.msk.msra.mxu0 %vm3190_vm8, %v2869_v5  ;;  %2578 = vmatpush3.msk.msra.mxu1 %vm3246_vm12, %v2869_v5 }
 0x1a6   :  { %2606 = vmatprep.subr.mxu0 %v2868_v20  ;;  %2579 = vmatprep.subr.mxu1 %v2868_v20 }
 0x1a7   :  { %2607 = vmatpush3.msk.msra.mxu0 %vm3204_vm9, %v2869_v5  ;;  %2580 = vmatpush3.msk.msra.mxu1 %vm3260_vm13, %v2869_v5 }
 0x1a8   :  { %2608 = vmatprep.subr.mxu0 %v2868_v20  ;;  %2581 = vmatprep.subr.mxu1 %v2868_v20 }
 0x1a9   :  { %2609 = vmatpush3.msk.msra.mxu0 %vm3218_vm10, %v2869_v5  ;;  %2582 = vmatpush3.msk.msra.mxu1 %vm3273_vm14, %v2869_v5 }
 0x1aa   :  { %2610 = vmatprep.subr.mxu0 %v2868_v20  ;;  %2583 = vmatprep.subr.mxu1 %v2868_v20 }
 0x1ab   :  { %2611 = vmatpush3.msk.msra.mxu0 %vm3232_vm11, %v2869_v5  ;;  %2584 = vmatpush3.msk.msra.mxu1 %vm3287_vm15, %v2869_v5 }
 0x1ac   :  { %2612 = vmatprep.subr.mxu0 %v2868_v20  ;;  %2585 = vmatprep.subr.mxu1 %v2868_v20 }
 0x1ad   :  { %2613 = vmatpush3.msk.msra.mxu0 %vm3246_vm12, %v2869_v5  ;;  %2586 = vmatpush3.msk.msra.mxu1 %vm3301_vm1, %v2869_v5 }
 0x1ae   :  { %2614 = vmatprep.subr.mxu0 %v2868_v20  ;;  %2587 = vmatprep.subr.mxu1 %v2868_v20 }
 0x1af   :  { %2615 = vmatpush3.msk.msra.mxu0 %vm3260_vm13, %v2869_v5  ;;  %2588 = vmatpush3.msk.msra.mxu1 %vm3315_vm2, %v2869_v5 }
 0x1b0   :  { %2616 = vmatprep.subr.mxu0 %v2868_v20  ;;  %2589 = vmatprep.subr.mxu1 %v2868_v20 }
 0x1b1   :  { %2617 = vmatpush3.msk.msra.mxu0 %vm3273_vm14, %v2869_v5  ;;  %2626 = vmatprep.mubr.msk.f32.mxu0 %vm3754_vm0, %v2868_v20 }
 0x1b2   :  { %2618 = vmatprep.subr.mxu0 %v2868_v20 }
 0x1b3   :  { %2619 = vmatpush3.msk.msra.mxu0 %vm3287_vm15, %v2869_v5  ;;  %vm3802_vm15 = vcmask 261120  }
 0x1b4   :  { %2620 = vmatprep.subr.mxu0 %v2868_v20 }
 0x1b5   :  { %2621 = vmatpush3.msk.msra.mxu0 %vm3301_vm1, %v2869_v5  ;;  %vm3328_vm1 = vcmp.eq.s32.totalorder %v145_v58, %v2924_v4  ;;  %v2202_v4 = vld [vmem:[%s3743_s2 + $0xe8] sm:$0xff] }
 0x1b6   :  { %2622 = vmatprep.subr.mxu0 %v2868_v20  ;;  %v3798_v10 = vsel %vm3328_vm1, 4294967295, %v3797_v10  ;;  %2590 = vmatpush3.msk.msra.mxu1 %vm3328_vm1, %v2869_v5 }
 0x1b7   :  { %2623 = vmatpush3.msk.msra.mxu0 %vm3315_vm2, %v2869_v5  ;;  %2629 = vmatprep.subr.mxu1 %v2868_v20  ;;  %vm3801_vm2 = vmmov 0  }
 0x1b8   :  { %2624 = vmatprep.subr.mxu0 %v2868_v20 }
 0x1b9   :  { %2625 = vmatpush3.msk.msra.mxu0 %vm3328_vm1, %v2869_v5  ;;  %vm3373_vm1 = vcmp.eq.s32.totalorder %v385_v61, %v2922_v3 }
 0x25a   :  { %v2555_v62 = vpop.f32.mrf.mxu0 }
 0x25b   :  { %v3347_v16 = vadd.f32 %v2555_v62, %v697_v63  ;;  %v3799_v62 = vmov 0  ;;  %v2204_v63 = vld [vmem:[%s3743_s2 + $0xf8] sm:$0xff] }
 0x25c   :  { %v894_v15 = vpop.f32.mrf.mxu0  ;;  %v3800_v62 = vsel %vm3373_vm1, 4294967295, %v3799_v62  ;;  %2653 = vmatprep.subr.mxu0 %v2204_v63 }
 0x25d   :  { %v3349_v17 = vadd.f32 %v894_v15, %v692_v0  ;;  %v927_v7 = vmul.f32 %v3347_v16, %v3347_v16  ;;  %v2203_v0 = vld [vmem:[%s3743_s2 + $0xf0] sm:$0xff]  ;;  %v2200_v15 = vld [vmem:[%s3743_s2 + $0xd8] sm:$0xff] }
 0x25e   :  { %v2558_v18 = vpop.f32.mrf.mxu0 }
 0x25f   :  { %v926_v27 = vmul.f32 %v3349_v17, %v3349_v17  ;;  %v917_v8 = vadd.f32 %v3347_v16, %v3349_v17  ;;  %v3359_v30 = vadd.f32 %v2558_v18, %v707_v19  ;;  %v2199_v18 = vld [vmem:[%s3743_s2 + $0xd0] sm:$0xff]  ;;  %v2198_v19 = vld [vmem:[%s3743_s2 + $0xc8] sm:$0xff] }
 0x260   :  { %v904_v28 = vpop.f32.mrf.mxu0 }
 0x261   :  { %v3361_v31 = vadd.f32 %v904_v28, %v702_v22  ;;  %v930_v33 = vadd.f32 %v927_v7, %v926_v27  ;;  %v929_v12 = vmul.f32 %v3359_v30, %v3359_v30  ;;  %v2197_v22 = vld [vmem:[%s3743_s2 + $0xc0] sm:$0xff]  ;;  %v2196_v27 = vld [vmem:[%s3743_s2 + $0xb8] sm:$0xff]  ;;  %v2195_v28 = vld [vmem:[%s3743_s2 + $0xb0] sm:$0xff] }
 0x262   :  { %v2194_v7 = vld [vmem:[%s3743_s2 + $0xa8] sm:$0xff] }
 0x263   :  { %v918_v34 = vadd.f32 %v917_v8, %v3361_v31  ;;  %v928_v9 = vmul.f32 %v3361_v31, %v3361_v31 }
 0x265   :  { %v919_v36 = vadd.f32 %v918_v34, %v3359_v30  ;;  %v931_v37 = vadd.f32 %v930_v33, %v928_v9 }
 0x267   :  { %v920_v39 = vrot.slane %v919_v36, 4  ;;  %v932_v40 = vadd.f32 %v931_v37, %v929_v12 }
 0x269   :  { %v921_v42 = vadd.f32 %v920_v39, %v919_v36  ;;  %v933_v43 = vrot.slane %v932_v40, 4 }
 0x26b   :  { %v922_v45 = vrot.slane %v921_v42, 2  ;;  %v934_v46 = vadd.f32 %v933_v43, %v932_v40 }
 0x26d   :  { %v923_v51 = vadd.f32 %v922_v45, %v921_v42  ;;  %v935_v54 = vrot.slane %v934_v46, 2  ;;  %v1084_v42 = vld [vmem:[%s3744_s3] sm:$0x1] }
 0x26f   :  { %v924_v56 = vrot.slane %v923_v51, 1  ;;  %v936_v57 = vadd.f32 %v935_v54, %v934_v46  ;;  %v1088_v46 = vld [vmem:[%s3745_s4] sm:$0x1] }
 0x271   :  { %v925_v58 = vadd.f32 %v924_v56, %v923_v51  ;;  %v937_v59 = vrot.slane %v936_v57, 1  ;;  %v2193_v56 = vld [vmem:[%s3743_s2 + $0xa0] sm:$0xff] }
 0x273   :  { %2592 = vmatmul.mubr.f32.vlgmr.msra.gmra.mxu1 %v925_v58  ;;  %v938_v60 = vadd.f32 %v937_v59, %v936_v57  ;;  %v2192_v57 = vld [vmem:[%s3743_s2 + $0x98] sm:$0xff]  ;;  %v2191_v58 = vld [vmem:[%s3743_s2 + $0x90] sm:$0xff]  ;;  %v2189_v59 = vld [vmem:[%s3743_s2 + $0x80] sm:$0xff] }
 0x274   :  { %2631 = vmatprep.mubr.msk.f32.mxu1 %vm3754_vm0, %v2868_v20  ;;  %2630 = vmatpush3.msk.msra.mxu1 %vm3373_vm1, %v2869_v5  ;;  %vm3760_vm0 = vcmask 64512  }
 0x275   :  { %2627 = vmatmul.mubr.f32.vlgmr.msra.gmra.mxu0 %v938_v60  ;;  %2634 = vmatprep.subr.mxu1 %v2868_v20  ;;  %v3445_v60 = vsub.s32 0, %v2922_v3 }
 0x276   :  { %2654 = vmatpush3.msra.mxu0 %v2204_v63 }
 0x277   :  { %2655 = vmatprep.subr.mxu0 %v2203_v0 }
 0x278   :  { %2656 = vmatpush3.msra.mxu0 %v2203_v0 }
 0x279   :  { %2657 = vmatprep.subr.mxu0 %v2202_v4 }
 0x27a   :  { %2658 = vmatpush3.msra.mxu0 %v2202_v4 }
 0x27b   :  { %2659 = vmatprep.subr.mxu0 %v2201_v13 }
 0x27c   :  { %2660 = vmatpush3.msra.mxu0 %v2201_v13 }
 0x27d   :  { %2661 = vmatprep.subr.mxu0 %v2200_v15 }
 0x27e   :  { %2662 = vmatpush3.msra.mxu0 %v2200_v15 }
 0x27f   :  { %2663 = vmatprep.subr.mxu0 %v2199_v18 }
 0x280   :  { %2664 = vmatpush3.msra.mxu0 %v2199_v18 }
 0x281   :  { %2665 = vmatprep.subr.mxu0 %v2198_v19 }
 0x282   :  { %2666 = vmatpush3.msra.mxu0 %v2198_v19 }
 0x283   :  { %2667 = vmatprep.subr.mxu0 %v2197_v22 }
 0x284   :  { %2668 = vmatpush3.msra.mxu0 %v2197_v22 }
 0x285   :  { %2669 = vmatprep.subr.mxu0 %v2196_v27 }
 0x286   :  { %2670 = vmatpush3.msra.mxu0 %v2196_v27 }
 0x287   :  { %2671 = vmatprep.subr.mxu0 %v2195_v28 }
 0x288   :  { %2672 = vmatpush3.msra.mxu0 %v2195_v28 }
 0x289   :  { %2673 = vmatprep.subr.mxu0 %v2194_v7 }
 0x28a   :  { %2674 = vmatpush3.msra.mxu0 %v2194_v7 }
 0x28b   :  { %2675 = vmatprep.subr.mxu0 %v2193_v56 }
 0x28c   :  { %2676 = vmatpush3.msra.mxu0 %v2193_v56 }
 0x28d   :  { %2677 = vmatprep.subr.mxu0 %v2192_v57 }
 0x28e   :  { %2678 = vmatpush3.msra.mxu0 %v2192_v57 }
 0x28f   :  { %2679 = vmatprep.subr.mxu0 %v2191_v58 }
 0x290   :  { %2680 = vmatpush3.msra.mxu0 %v2191_v58  ;;  %v2223_v58 = vld [vmem:[%s3743_s2 + $0x170] sm:$0xff] }
 0x333   :  { %v1005_v8 = vpop.f32.mrf.mxu1 }
 0x334   :  { %v1010_v33 = vmul.f32 0.001953125, %v1005_v8 }
 0x335   :  { %v2593_v34 = vpop.f32.mrf.mxu1  ;;  %v1077_v9 = vpop.f32.mrf.mxu0 }
 0x336   :  { %v1082_v12 = vmul.f32 %v1010_v33, %v1010_v33  ;;  %v1081_v36 = vmul.f32 0.001953125, %v1077_v9 }
 0x337   :  { %v2628_v37 = vpop.f32.mrf.mxu0 }
 0x338   :  { %v1083_v39 = vsub.f32 %v1081_v36, %v1082_v12  ;;  %v1347_v36 = vld [vmem:[%s3743_s2 + $0x20] sm:$0xff]  ;;  %v1346_v37 = vld [vmem:[%s3743_s2 + $0x18] sm:$0xff] }
 0x33a   :  { %v1085_v40 = vadd.f32 1e-05, %v1083_v39  ;;  %v1345_v39 = vld [vmem:[%s3743_s2 + $0x10] sm:$0xff] }
 0x33c   :  { %2864 = vrsqrt.f32 %v1085_v40  ;;  %v1344_v40 = vld [vmem:[%s3743_s2 + $0x8] sm:$0xff] }
 0x349   :  { %v2865_v43 = vpop.eup %2864 }
 0x34a   :  { %v1087_v45 = vmul.f32 %v2865_v43, %v1084_v42  ;;  %v1343_v42 = vld [vmem:[%s3743_s2] sm:$0xff]  ;;  %v2224_v43 = vld [vmem:[%s3743_s2 + $0x178] sm:$0xff] }
 0x34c   :  { %2632 = vmatmul.mubr.msk.f32.vlgmr.msra.gmra.mxu1 %vm3760_vm0, %v1087_v45  ;;  %v1089_v51 = vmul.f32 %v1087_v45, %v1010_v33 }
 0x34d   :  { %2635 = vmatpush3.msk.msra.mxu1 %vm3373_vm1, %v2869_v5  ;;  %2636 = vmatprep.mubr.msk.f32.mxu1 %vm3801_vm2, %v2868_v20 }
 0x34e   :  { %v1090_v54 = vsub.f32 %v1088_v46, %v1089_v51 }
 0x350   :  { %2637 = vmatmul.mubr.msk.f32.vlgmr.msra.gmra.mxu1 %vm3760_vm0, %v1090_v54  ;;  %vm3803_vm0 = vmmov %vm3802_vm15 }
 0x351   :  { %2647 = vmatprep.mubr.msk.f32.mxu1 %vm3802_vm15, %v2971_v21  ;;  %v2190_v21 = vld [vmem:[%s3743_s2 + $0x88] sm:$0xff]  ;;  %vm3804_vm1 = vmmov %vm3803_vm0 }
 0x352   :  { %2681 = vmatprep.subr.mxu0 %v2190_v21  ;;  %vm3805_vm14 = vmmov %vm3803_vm0 }
 0x353   :  { %2682 = vmatpush3.msra.mxu0 %v2190_v21  ;;  %vm3806_vm13 = vmmov %vm3803_vm0 }
 0x354   :  { %2683 = vmatprep.subr.mxu0 %v2189_v59 }
 0x355   :  { %2684 = vmatpush3.msra.mxu0 %v2189_v59 }
 0x40c   :  { %v1161_v61 = vpop.f32.mrf.mxu1 }
 0x40d   :  { %v1241_v63 = vrot.slane %v1161_v61, %v3445_v60  ;;  %v2222_v61 = vld [vmem:[%s3743_s2 + $0x168] sm:$0xff] }
 0x40e   :  { %v2633_v0 = vpop.f32.mrf.mxu1 }
 0x40f   :  { %v1242_v4 = vmul.f32 %v1241_v63, %v3349_v17  ;;  %v1243_v15 = vmul.f32 %v1241_v63, %v3347_v16  ;;  %v1244_v18 = vmul.f32 %v1241_v63, %v3361_v31  ;;  %v1245_v19 = vmul.f32 %v1241_v63, %v3359_v30  ;;  %v1358_v16 = vld [vmem:[%s3743_s2 + $0x78] sm:$0xff]  ;;  %v1357_v17 = vld [vmem:[%s3743_s2 + $0x70] sm:$0xff]  ;;  %v1348_v31 = vld [vmem:[%s3743_s2 + $0x28] sm:$0xff] }
 0x410   :  { %v1234_v13 = vpop.f32.mrf.mxu1  ;;  %v1349_v30 = vld [vmem:[%s3743_s2 + $0x30] sm:$0xff] }
 0x411   :  { %v1249_v22 = vrot.slane %v1234_v13, %v3445_v60  ;;  %v2220_v13 = vld [vmem:[%s3743_s2 + $0x158] sm:$0xff] }
 0x412   :  { %v2638_v27 = vpop.f32.mrf.mxu1 }
 0x413   :  { %v1250_v28 = vadd.f32 %v1249_v22, %v1242_v4  ;;  %v1251_v7 = vadd.f32 %v1249_v22, %v1243_v15  ;;  %v1252_v3 = vadd.f32 %v1249_v22, %v1244_v18  ;;  %v1253_v8 = vadd.f32 %v1249_v22, %v1245_v19  ;;  %v2221_v4 = vld [vmem:[%s3743_s2 + $0x160] sm:$0xff]  ;;  %v2219_v15 = vld [vmem:[%s3743_s2 + $0x150] sm:$0xff]  ;;  %v2218_v18 = vld [vmem:[%s3743_s2 + $0x148] sm:$0xff] }
 0x414   :  { %v2217_v19 = vld [vmem:[%s3743_s2 + $0x140] sm:$0xff]  ;;  %v2216_v22 = vld [vmem:[%s3743_s2 + $0x138] sm:$0xff]  ;;  %v2215_v27 = vld [vmem:[%s3743_s2 + $0x130] sm:$0xff] }
 0x415   :  { %v1254_v33 = vmax.f32 %v1250_v28, 0.0  ;;  %v1255_v34 = vmax.f32 %v1251_v7, 0.0  ;;  %v1257_v9 = vmax.f32 %v1253_v8, 0.0  ;;  %v1256_v12 = vmax.f32 %v1252_v3, 0.0  ;;  %v2214_v28 = vld [vmem:[%s3743_s2 + $0x128] sm:$0xff]  ;;  %v2213_v7 = vld [vmem:[%s3743_s2 + $0x120] sm:$0xff] }
 0x416   :  { %v2212_v3 = vld [vmem:[%s3743_s2 + $0x118] sm:$0xff]  ;;  %v2211_v8 = vld [vmem:[%s3743_s2 + $0x110] sm:$0xff] }
 0x417   :  { %2639 = vmatprep.subr.mxu1 %v1257_v9  ;;  %2685 = vmatprep.mubr.f32.mxu0 %v1254_v33 }
 0x418   :  { %2729 = vmatprep.subr.mxu0 %v1257_v9  ;;  %2640 = vmatpush3.msra.mxu1 %v1257_v9 }
 0x419   :  { %2686 = vmatmul.mubr.f32.vlgmr.msra.gmra.mxu0 %v1255_v34  ;;  %2641 = vmatprep.subr.mxu1 %v1256_v12 }
 0x41a   :  { %2730 = vmatpush3.msra.mxu0 %v1257_v9  ;;  %2688 = vmatprep.mubr.f32.mxu0 %v1256_v12 }
 0x41b   :  { %2731 = vmatprep.subr.mxu0 %v1256_v12  ;;  %2642 = vmatpush3.msra.mxu1 %v1256_v12 }
 0x41c   :  { %2732 = vmatpush3.msra.mxu0 %v1256_v12  ;;  %2643 = vmatprep.subr.mxu1 %v1255_v34 }
 0x41d   :  { %2733 = vmatprep.subr.mxu0 %v1255_v34  ;;  %2644 = vmatpush3.msra.mxu1 %v1255_v34 }
 0x41e   :  { %2689 = vmatmul.mubr.f32.gmra.mxu0 %v1257_v9  ;;  %2645 = vmatprep.subr.mxu1 %v1254_v33  ;;  %v2209_v9 = vld [vmem:[%s3743_s2 + $0x100] sm:$0xff] }
 0x41f   :  { %2734 = vmatpush3.msra.mxu0 %v1255_v34  ;;  %2646 = vmatpush3.msra.mxu1 %v1254_v33 }
 0x420   :  { %2735 = vmatprep.subr.mxu0 %v1254_v33  ;;  %2648 = vmatmul.mubr.msk.f32.vlgmr.msra.gmra.mxu1 %vm3802_vm15, %v2982_v23  ;;  %vm3807_vm15 = vmmov %vm3803_vm0  ;;  %v1356_v23 = vld [vmem:[%s3743_s2 + $0x68] sm:$0xff] }
 0x421   :  { %2736 = vmatpush3.msra.mxu0 %v1254_v33  ;;  %2650 = vmatprep.mubr.msk.f32.mxu1 %vm3803_vm0, %v2991_v25  ;;  %v1355_v25 = vld [vmem:[%s3743_s2 + $0x60] sm:$0xff]  ;;  %v2210_v33 = vld [vmem:[%s3743_s2 + $0x108] sm:$0xff] }
 0x422   :  { %2737 = vmatprep.mubr.msk.f32.mxu0 %vm3804_vm1, %v3053_v47  ;;  %2691 = vmatprep.subr.mxu1 %v1358_v16  ;;  %v1353_v47 = vld [vmem:[%s3743_s2 + $0x50] sm:$0xff]  ;;  %vm3810_vm1 = vnez %v3792_v55 }
 0x423   :  { %2738 = vmatmul.mubr.msk.f32.vlgmr.msra.gmra.mxu0 %vm3805_vm14, %v3065_v48  ;;  %2692 = vmatpush3.msra.mxu1 %v1358_v16  ;;  %v1352_v48 = vld [vmem:[%s3743_s2 + $0x48] sm:$0xff]  ;;  %vm3809_vm14 = vnez %v3790_v53 }
 0x424   :  { %2651 = vmatmul.mubr.msk.f32.gmra.mxu1 %vm3806_vm13, %v2994_v26  ;;  %2740 = vmatprep.mubr.msk.f32.mxu0 %vm3807_vm15, %v3072_v50  ;;  %v1354_v26 = vld [vmem:[%s3743_s2 + $0x58] sm:$0xff]  ;;  %v1351_v50 = vld [vmem:[%s3743_s2 + $0x40] sm:$0xff]  ;;  %vm3808_vm13 = vnez %v3788_v49  ;;  %vm3811_vm15 = vnez %v3794_v14 }
 0x425   :  { %2693 = vmatprep.subr.mxu1 %v1357_v17  ;;  %2781 = vmatprep.subr.mxu0 %v2868_v20 }
 0x426   :  { %2694 = vmatpush3.msra.mxu1 %v1357_v17  ;;  %2782 = vmatpush3.msk.msra.mxu0 %vm3110_vm3, %v2869_v5 }
 0x427   :  { %2741 = vmatmul.mubr.msk.f32.gmra.mxu0 %vm3803_vm0, %v3083_v52  ;;  %2695 = vmatprep.subr.mxu1 %v1356_v23  ;;  %v1350_v52 = vld [vmem:[%s3743_s2 + $0x38] sm:$0xff]  ;;  %vm3812_vm0 = vnez %v3796_v11 }
 0x428   :  { %2696 = vmatpush3.msra.mxu1 %v1356_v23  ;;  %2783 = vmatprep.subr.mxu0 %v2868_v20 }
 0x429   :  { %2697 = vmatprep.subr.mxu1 %v1355_v25  ;;  %2784 = vmatpush3.msk.msra.mxu0 %vm3115_vm4, %v2869_v5 }
 0x42a   :  { %2698 = vmatpush3.msra.mxu1 %v1355_v25  ;;  %2785 = vmatprep.subr.mxu0 %v2868_v20 }
 0x42b   :  { %2699 = vmatprep.subr.mxu1 %v1354_v26  ;;  %2786 = vmatpush3.msk.msra.mxu0 %vm3124_vm5, %v2869_v5 }
 0x42c   :  { %2700 = vmatpush3.msra.mxu1 %v1354_v26  ;;  %2787 = vmatprep.subr.mxu0 %v2868_v20 }
 0x42d   :  { %2701 = vmatprep.subr.mxu1 %v1353_v47  ;;  %2788 = vmatpush3.msk.msra.mxu0 %vm3163_vm6, %v2869_v5 }
 0x42e   :  { %2702 = vmatpush3.msra.mxu1 %v1353_v47  ;;  %2789 = vmatprep.subr.mxu0 %v2868_v20 }
 0x42f   :  { %2703 = vmatprep.subr.mxu1 %v1352_v48  ;;  %2790 = vmatpush3.msk.msra.mxu0 %vm3176_vm7, %v2869_v5 }
 0x430   :  { %2704 = vmatpush3.msra.mxu1 %v1352_v48  ;;  %2791 = vmatprep.subr.mxu0 %v2868_v20 }
 0x431   :  { %2705 = vmatprep.subr.mxu1 %v1351_v50  ;;  %2792 = vmatpush3.msk.msra.mxu0 %vm3190_vm8, %v2869_v5 }
 0x432   :  { %2706 = vmatpush3.msra.mxu1 %v1351_v50  ;;  %2793 = vmatprep.subr.mxu0 %v2868_v20 }
 0x433   :  { %2707 = vmatprep.subr.mxu1 %v1350_v52  ;;  %2794 = vmatpush3.msk.msra.mxu0 %vm3204_vm9, %v2869_v5 }
 0x434   :  { %2708 = vmatpush3.msra.mxu1 %v1350_v52  ;;  %2795 = vmatprep.subr.mxu0 %v2868_v20 }
 0x435   :  { %2709 = vmatprep.subr.mxu1 %v1349_v30  ;;  %2796 = vmatpush3.msk.msra.mxu0 %vm3218_vm10, %v2869_v5 }
 0x436   :  { %2710 = vmatpush3.msra.mxu1 %v1349_v30  ;;  %2797 = vmatprep.subr.mxu0 %v2868_v20 }
 0x437   :  { %2711 = vmatprep.subr.mxu1 %v1348_v31  ;;  %2798 = vmatpush3.msk.msra.mxu0 %vm3232_vm11, %v2869_v5 }
 0x438   :  { %2712 = vmatpush3.msra.mxu1 %v1348_v31  ;;  %2799 = vmatprep.subr.mxu0 %v2868_v20 }
 0x439   :  { %2800 = vmatpush3.msk.msra.mxu0 %vm3246_vm12, %v2869_v5  ;;  %2813 = vmatprep.mubr.msk.f32.mxu0 %vm3801_vm2, %v2868_v20 }
 0x43a   :  { %2801 = vmatprep.subr.mxu0 %v2868_v20  ;;  %2713 = vmatprep.subr.mxu1 %v1347_v36 }
 0x43b   :  { %2802 = vmatpush3.msk.msra.mxu0 %vm3808_vm13, %v2869_v5  ;;  %2714 = vmatpush3.msra.mxu1 %v1347_v36 }
 0x43c   :  { %2803 = vmatprep.subr.mxu0 %v2868_v20  ;;  %2715 = vmatprep.subr.mxu1 %v1346_v37 }
 0x43d   :  { %2804 = vmatpush3.msk.msra.mxu0 %vm3809_vm14, %v2869_v5  ;;  %vm3813_vm14 = vnez %v3798_v10  ;;  %2716 = vmatpush3.msra.mxu1 %v1346_v37 }
 0x43e   :  { %2805 = vmatprep.subr.mxu0 %v2868_v20  ;;  %2717 = vmatprep.subr.mxu1 %v1345_v39 }
 0x43f   :  { %2806 = vmatpush3.msk.msra.mxu0 %vm3810_vm1, %v2869_v5  ;;  %2718 = vmatpush3.msra.mxu1 %v1345_v39 }
 0x440   :  { %2807 = vmatprep.subr.mxu0 %v2868_v20  ;;  %2719 = vmatprep.subr.mxu1 %v1344_v40 }
 0x441   :  { %2808 = vmatpush3.msk.msra.mxu0 %vm3811_vm15, %v2869_v5  ;;  %2720 = vmatpush3.msra.mxu1 %v1344_v40 }
 0x442   :  { %2809 = vmatprep.subr.mxu0 %v2868_v20  ;;  %2721 = vmatprep.subr.mxu1 %v1343_v42 }
 0x443   :  { %2810 = vmatpush3.msk.msra.mxu0 %vm3812_vm0, %v2869_v5  ;;  %2722 = vmatpush3.msra.mxu1 %v1343_v42 }
 0x444   :  { %2811 = vmatprep.subr.mxu0 %v2868_v20  ;;  %2743 = vmatprep.subr.mxu1 %v2224_v43 }
 0x445   :  { %2812 = vmatpush3.msk.msra.mxu0 %vm3813_vm14, %v2869_v5 }
 0x446   :  { %2851 = vmatprep.subr.mxu0 %v2868_v20 }
 0x4d9   :  { %v3585_v45 = vpop.f32.mrf.mxu0 }
 0x4db   :  { %v3587_v46 = vpop.f32.mrf.mxu0 }
 0x4de   :  { %v3589_v51 = vpop.f32.mrf.mxu0 }
 0x4e0   :  { %v2649_v54 = vpop.f32.mrf.mxu1  ;;  %v3591_v56 = vpop.f32.mrf.mxu0 }
 0x4e2   :  { %v1324_v57 = vpop.f32.mrf.mxu1 }
 0x4e3   :  { %2723 = vmatprep.mubr.f32.mxu1 %v1324_v57  ;;  %v2739_v21 = vpop.f32.mrf.mxu0 }
 0x4e4   :  { %v2652_v59 = vpop.f32.mrf.mxu1  ;;  %2724 = vmatmul.mubr.f32.vlgmr.msra.gmra.mxu1 %v2649_v54 }
 0x4e5   :  { %2744 = vmatpush3.msra.mxu1 %v2224_v43  ;;  %v1612_v0 = vpop.f32.mrf.mxu0 }
 0x4e6   :  { %2745 = vmatprep.subr.mxu1 %v2223_v58  ;;  %v1334_v63 = vpop.f32.mrf.mxu1 }
 0x4e7   :  { %2746 = vmatpush3.msra.mxu1 %v2223_v58  ;;  %2726 = vmatprep.mubr.f32.mxu1 %v1334_v63  ;;  %v2742_v34 = vpop.f32.mrf.mxu0 }
 0x4e8   :  { %2747 = vmatprep.subr.mxu1 %v2222_v61  ;;  %2727 = vmatmul.mubr.f32.gmra.mxu1 %v2652_v59 }
 0x4e9   :  { %2748 = vmatpush3.msra.mxu1 %v2222_v61  ;;  %2775 = vmatprep.mubr.f32.mxu1 %v1612_v0  ;;  %v1622_v12 = vpop.f32.mrf.mxu0 }
 0x4ea   :  { %2749 = vmatprep.subr.mxu1 %v2221_v4 }
 0x4eb   :  { %2750 = vmatpush3.msra.mxu1 %v2221_v4 }
 0x4ec   :  { %2751 = vmatprep.subr.mxu1 %v2220_v13 }
 0x4ed   :  { %2752 = vmatpush3.msra.mxu1 %v2220_v13 }
 0x4ee   :  { %2753 = vmatprep.subr.mxu1 %v2219_v15 }
 0x4ef   :  { %2754 = vmatpush3.msra.mxu1 %v2219_v15  ;;  %v1903_v15 = vld [vmem:[%s3746_s5] sm:$0x1] }
 0x4f0   :  { %2755 = vmatprep.subr.mxu1 %v2218_v18 }
 0x4f1   :  { %2756 = vmatpush3.msra.mxu1 %v2218_v18 }
 0x4f2   :  { %2757 = vmatprep.subr.mxu1 %v2217_v19 }
 0x4f3   :  { %2758 = vmatpush3.msra.mxu1 %v2217_v19 }
 0x4f4   :  { %2759 = vmatprep.subr.mxu1 %v2216_v22 }
 0x4f5   :  { %2760 = vmatpush3.msra.mxu1 %v2216_v22  ;;  %v1907_v22 = vld [vmem:[%s3747_s6] sm:$0x1] }
 0x4f6   :  { %2761 = vmatprep.subr.mxu1 %v2215_v27 }
 0x4f7   :  { %2762 = vmatpush3.msra.mxu1 %v2215_v27 }
 0x4f8   :  { %2763 = vmatprep.subr.mxu1 %v2214_v28 }
 0x4f9   :  { %2764 = vmatpush3.msra.mxu1 %v2214_v28 }
 0x4fa   :  { %2765 = vmatprep.subr.mxu1 %v2213_v7 }
 0x4fb   :  { %2766 = vmatpush3.msra.mxu1 %v2213_v7 }
 0x4fc   :  { %2767 = vmatprep.subr.mxu1 %v2212_v3 }
 0x4fd   :  { %2768 = vmatpush3.msra.mxu1 %v2212_v3 }
 0x4fe   :  { %2769 = vmatprep.subr.mxu1 %v2211_v8 }
 0x4ff   :  { %2770 = vmatpush3.msra.mxu1 %v2211_v8 }
 0x500   :  { %2771 = vmatprep.subr.mxu1 %v2210_v33 }
 0x501   :  { %2772 = vmatpush3.msra.mxu1 %v2210_v33 }
 0x502   :  { %2773 = vmatprep.subr.mxu1 %v2209_v9 }
 0x503   :  { %2774 = vmatpush3.msra.mxu1 %v2209_v9 }
 0x504   :  { %2776 = vmatmul.mubr.f32.vlgmr.msra.gmra.mxu1 %v2739_v21  ;;  %2816 = vmatprep.subr.mxu1 %v2868_v20 }
 0x505   :  { %2778 = vmatprep.mubr.f32.mxu1 %v1622_v12  ;;  %2817 = vmatpush3.msk.msra.mxu1 %vm3110_vm3, %v2869_v5  ;;  %vm3814_vm3 = vnez %v3790_v53 }
 0x506   :  { %2818 = vmatprep.subr.mxu1 %v2868_v20 }
 0x507   :  { %2819 = vmatpush3.msk.msra.mxu1 %vm3115_vm4, %v2869_v5  ;;  %vm3815_vm4 = vnez %v3800_v62 }
 0x508   :  { %2779 = vmatmul.mubr.f32.gmra.mxu1 %v2742_v34  ;;  %2820 = vmatprep.subr.mxu1 %v2868_v20 }
 0x509   :  { %2821 = vmatpush3.msk.msra.mxu1 %vm3124_vm5, %v2869_v5  ;;  %2848 = vmatprep.mubr.msk.f32.mxu1 %vm3801_vm2, %v2868_v20  ;;  %vm3816_vm5 = vcmask 64512  }
 0x50a   :  { %2822 = vmatprep.subr.mxu1 %v2868_v20 }
 0x50b   :  { %2823 = vmatpush3.msk.msra.mxu1 %vm3163_vm6, %v2869_v5  ;;  %vm3817_vm6 = vmmov %vm3816_vm5 }
 0x50c   :  { %2824 = vmatprep.subr.mxu1 %v2868_v20 }
 0x50d   :  { %2825 = vmatpush3.msk.msra.mxu1 %vm3176_vm7, %v2869_v5 }
 0x50e   :  { %2826 = vmatprep.subr.mxu1 %v2868_v20 }
 0x50f   :  { %2827 = vmatpush3.msk.msra.mxu1 %vm3190_vm8, %v2869_v5 }
 0x510   :  { %2828 = vmatprep.subr.mxu1 %v2868_v20 }
 0x511   :  { %2829 = vmatpush3.msk.msra.mxu1 %vm3204_vm9, %v2869_v5 }
 0x512   :  { %2830 = vmatprep.subr.mxu1 %v2868_v20 }
 0x513   :  { %2831 = vmatpush3.msk.msra.mxu1 %vm3218_vm10, %v2869_v5 }
 0x514   :  { %2832 = vmatprep.subr.mxu1 %v2868_v20 }
 0x515   :  { %2833 = vmatpush3.msk.msra.mxu1 %vm3232_vm11, %v2869_v5 }
 0x516   :  { %2834 = vmatprep.subr.mxu1 %v2868_v20 }
 0x517   :  { %2835 = vmatpush3.msk.msra.mxu1 %vm3246_vm12, %v2869_v5 }
 0x518   :  { %2836 = vmatprep.subr.mxu1 %v2868_v20 }
 0x519   :  { %2837 = vmatpush3.msk.msra.mxu1 %vm3808_vm13, %v2869_v5 }
 0x51a   :  { %2838 = vmatprep.subr.mxu1 %v2868_v20 }
 0x51b   :  { %2839 = vmatpush3.msk.msra.mxu1 %vm3814_vm3, %v2869_v5 }
 0x51c   :  { %2840 = vmatprep.subr.mxu1 %v2868_v20 }
 0x51d   :  { %2841 = vmatpush3.msk.msra.mxu1 %vm3810_vm1, %v2869_v5 }
 0x51e   :  { %2842 = vmatprep.subr.mxu1 %v2868_v20 }
 0x51f   :  { %2843 = vmatpush3.msk.msra.mxu1 %vm3811_vm15, %v2869_v5 }
 0x520   :  { %2844 = vmatprep.subr.mxu1 %v2868_v20 }
 0x521   :  { %2845 = vmatpush3.msk.msra.mxu1 %vm3812_vm0, %v2869_v5 }
 0x522   :  { %2846 = vmatprep.subr.mxu1 %v2868_v20 }
 0x523   :  { %2847 = vmatpush3.msk.msra.mxu1 %vm3813_vm14, %v2869_v5 }
 0x5a4   :  { %v2725_v1 = vpop.f32.mrf.mxu1 }
 0x5a5   :  { %v1533_v32 = vadd.f32 %v2725_v1, %v3585_v45 }
 0x5a6   :  { %v1527_v2 = vpop.f32.mrf.mxu1 }
 0x5a7   :  { %v1528_v35 = vadd.f32 %v1527_v2, %v3587_v46 }
 0x5a8   :  { %v2728_v6 = vpop.f32.mrf.mxu1 }
 0x5a9   :  { %v1543_v53 = vadd.f32 %v2728_v6, %v3589_v51 }
 0x5aa   :  { %v1537_v24 = vpop.f32.mrf.mxu1 }
 0x5ab   :  { %v1538_v55 = vadd.f32 %v1537_v24, %v3591_v56 }
 0x5c4   :  { %v2777_v29 = vpop.f32.mrf.mxu1 }
 0x5c5   :  { %v1734_v41 = vadd.f32 %v2777_v29, %v1533_v32 }
 0x5c6   :  { %v1714_v38 = vpop.f32.mrf.mxu1 }
 0x5c7   :  { %v1733_v44 = vadd.f32 %v1714_v38, %v1528_v35  ;;  %v1747_v10 = vmul.f32 %v1734_v41, %v1734_v41 }
 0x5c8   :  { %v2780_v49 = vpop.f32.mrf.mxu1 }
 0x5c9   :  { %v1746_v14 = vmul.f32 %v1733_v44, %v1733_v44  ;;  %v1737_v16 = vadd.f32 %v1734_v41, %v1733_v44  ;;  %v1736_v17 = vadd.f32 %v2780_v49, %v1543_v53 }
 0x5ca   :  { %v1724_v11 = vpop.f32.mrf.mxu1 }
 0x5cb   :  { %v1735_v23 = vadd.f32 %v1724_v11, %v1538_v55  ;;  %v1750_v25 = vadd.f32 %v1747_v10, %v1746_v14  ;;  %v1749_v48 = vmul.f32 %v1736_v17, %v1736_v17 }
 0x5cd   :  { %v1738_v26 = vadd.f32 %v1737_v16, %v1735_v23  ;;  %v1748_v47 = vmul.f32 %v1735_v23, %v1735_v23 }
 0x5cf   :  { %v1739_v50 = vadd.f32 %v1738_v26, %v1736_v17  ;;  %v1751_v52 = vadd.f32 %v1750_v25, %v1748_v47 }
 0x5d1   :  { %v1740_v30 = vrot.slane %v1739_v50, 4  ;;  %v1752_v31 = vadd.f32 %v1751_v52, %v1749_v48 }
 0x5d3   :  { %v1741_v36 = vadd.f32 %v1740_v30, %v1739_v50  ;;  %v1753_v37 = vrot.slane %v1752_v31, 4 }
 0x5d5   :  { %v1742_v39 = vrot.slane %v1741_v36, 2  ;;  %v1754_v40 = vadd.f32 %v1753_v37, %v1752_v31 }
 0x5d7   :  { %v1743_v42 = vadd.f32 %v1742_v39, %v1741_v36  ;;  %v1755_v43 = vrot.slane %v1754_v40, 2 }
 0x5d9   :  { %v1744_v45 = vrot.slane %v1743_v42, 1  ;;  %v1756_v46 = vadd.f32 %v1755_v43, %v1754_v40 }
 0x5db   :  { %v1745_v51 = vadd.f32 %v1744_v45, %v1743_v42  ;;  %v1757_v54 = vrot.slane %v1756_v46, 1 }
 0x5dd   :  { %2814 = vmatmul.mubr.f32.vlgmr.msra.gmra.mxu0 %v1745_v51  ;;  %v1758_v56 = vadd.f32 %v1757_v54, %v1756_v46 }
 0x5de   :  { %2852 = vmatpush3.msk.msra.mxu0 %vm3815_vm4, %v2869_v5  ;;  %2853 = vmatprep.mubr.msk.f32.mxu0 %vm3801_vm2, %v2868_v20 }
 0x5df   :  { %2849 = vmatmul.mubr.f32.vlgmr.msra.gmra.mxu1 %v1758_v56  ;;  %2856 = vmatprep.subr.mxu0 %v2868_v20 }
 0x69d   :  { %v1825_v57 = vpop.f32.mrf.mxu0 }
 0x69e   :  { %v1829_v58 = vmul.f32 0.001953125, %v1825_v57 }
 0x69f   :  { %v2815_v21 = vpop.f32.mrf.mxu0  ;;  %v1896_v59 = vpop.f32.mrf.mxu1 }
 0x6a0   :  { %v1901_v61 = vmul.f32 %v1829_v58, %v1829_v58  ;;  %v1900_v63 = vmul.f32 0.001953125, %v1896_v59 }
 0x6a1   :  { %v2850_v0 = vpop.f32.mrf.mxu1 }
 0x6a2   :  { %v1902_v4 = vsub.f32 %v1900_v63, %v1901_v61 }
 0x6a4   :  { %v1904_v13 = vadd.f32 1e-05, %v1902_v4 }
 0x6a6   :  { %2866 = vrsqrt.f32 %v1904_v13 }
 0x6b3   :  { %v2867_v18 = vpop.eup %2866 }
 0x6b4   :  { %v1906_v19 = vmul.f32 %v2867_v18, %v1903_v15 }
 0x6b6   :  { %2854 = vmatmul.mubr.msk.f32.vlgmr.msra.gmra.mxu0 %vm3816_vm5, %v1906_v19  ;;  %v1908_v27 = vmul.f32 %v1906_v19, %v1829_v58 }
 0x6b7   :  { %2857 = vmatpush3.msk.msra.mxu0 %vm3815_vm4, %v2869_v5  ;;  %2858 = vmatprep.mubr.msk.f32.mxu0 %vm3801_vm2, %v2868_v20 }
 0x6b8   :  { %v1909_v28 = vsub.f32 %v1907_v22, %v1908_v27 }
 0x6ba   :  { %2859 = vmatmul.mubr.msk.f32.vlgmr.msra.gmra.mxu0 %vm3817_vm6, %v1909_v28 }
 0x776   :  { %v1979_v7 = vpop.f32.mrf.mxu0 }
 0x777   :  { %v2059_v3 = vrot.slane %v1979_v7, %v3445_v60 }
 0x778   :  { %v2855_v8 = vpop.f32.mrf.mxu0 }
 0x779   :  { %v2060_v33 = vmul.f32 %v2059_v3, %v1733_v44  ;;  %v2061_v9 = vmul.f32 %v2059_v3, %v1734_v41  ;;  %v2062_v12 = vmul.f32 %v2059_v3, %v1735_v23  ;;  %v2063_v1 = vmul.f32 %v2059_v3, %v1736_v17 }
 0x77a   :  { %v2052_v34 = vpop.f32.mrf.mxu0 }
 0x77b   :  { %v2067_v2 = vrot.slane %v2052_v34, %v3445_v60 }
 0x77c   :  { %v2860_v6 = vpop.f32.mrf.mxu0 }
 0x77d   :  { %v2068_v62 = vadd.f32 %v2067_v2, %v2060_v33  ;;  %v2069_v5 = vadd.f32 %v2067_v2, %v2061_v9  ;;  %v2070_v24 = vadd.f32 %v2067_v2, %v2062_v12  ;;  %v2071_v29 = vadd.f32 %v2067_v2, %v2063_v1 }
 0x77f   :  { %v2072_v20 = vmax.f32 %v2068_v62, 0.0  ;;  %v2073_v32 = vmax.f32 %v2069_v5, 0.0  ;;  %v2074_v35 = vmax.f32 %v2070_v24, 0.0  ;;  %v2075_v38 = vmax.f32 %v2071_v29, 0.0 }
 0x781   :  { %2076 = vst [vmem:[%s3748_s7] sm:$0xff] %v2072_v20  ;;  %2077 = vst [vmem:[%s3748_s7 + $0x8] sm:$0xff] %v2073_v32 }
 0x782   :  { %2078 = vst [vmem:[%s3748_s7 + $0x10] sm:$0xff] %v2074_v35  ;;  %2079 = vst [vmem:[%s3748_s7 + $0x18] sm:$0xff] %v2075_v38 }

</bundles_post_ra>
